<compile_context>
chip_gen: v5e
topology: v5e:2x2
jax: 0.10.0
libtpu: 0.0.40
codegen_flags: <defaults>
</compile_context>

<pallas_src>
import jax
import jax.numpy as jnp
from jax.experimental import pallas as pl
from jax.experimental.pallas import tpu as pltpu

EPS = 1e-5


def se_conv_bn_kernel(s_ref, x_ref, w_ref, gamma_ref, beta_ref, o_ref):
    """Fused SE-gate + 1x1 conv + BatchNorm2d, channel-major layout.

    s_ref:     (1, Cin)    pre-sigmoid per-channel scale (x143)
    x_ref:     (Cin, P)    activations, channel-major (x139 flattened)
    w_ref:     (Cout, Cin) 1x1 conv weight
    gamma_ref: (Cout, 1)   BN affine weight
    beta_ref:  (Cout, 1)   BN affine bias
    o_ref:     (Cout, P)
    """
    p = x_ref.shape[1]
    inv_p = 1.0 / p

    # Fold the sigmoid gate into the (small) weight tile instead of scaling the
    # large activation:  (W * gate) @ x  ==  W @ (gate * x).
    gate = jax.nn.sigmoid(s_ref[...])                       # (1, Cin)
    w_gated = w_ref[...] * gate                             # (Cout, Cin)

    # 1x1 convolution == matmul on the MXU.
    y = jnp.dot(w_gated, x_ref[...],
                preferred_element_type=jnp.float32)         # (Cout, P)

    # One-pass BatchNorm2d statistics over pixels (biased variance, training
    # mode), folded into a single per-channel scale and bias.
    s1 = jnp.sum(y, axis=1, keepdims=True)                  # (Cout, 1)
    s2 = jnp.sum(y * y, axis=1, keepdims=True)              # (Cout, 1)
    mean = s1 * inv_p
    var = s2 * inv_p - mean * mean
    scale = gamma_ref[...] * jax.lax.rsqrt(var + EPS)       # (Cout, 1)
    bias = beta_ref[...] - mean * scale                     # (Cout, 1)

    # Single FMA write, lane-dense along P.
    o_ref[...] = y * scale + bias


def se_conv_bn(x143, x139, conv_w, bn_gamma, bn_beta):
    """x143: (N, Cin, 1, 1), x139: (N, Cin, H, W), conv_w: (Cout, Cin, 1, 1)."""
    N, Cin, H, W = x139.shape
    # Gate folding / free channel-major reshape assumes a single image, which
    # matches the traced module (N == 1).
    assert N == 1, "se_conv_bn is specialized to N == 1 (as in the module)"
    Cout = conv_w.shape[0]
    P = H * W

    # All of these reshapes are free (no data movement) for N == 1.
    x_cm = x139.reshape(Cin, P)                 # (Cin, P), channel-major
    s_row = x143.reshape(1, Cin)                # (1, Cin)
    w_mat = conv_w.reshape(Cout, Cin)           # (Cout, Cin)
    gamma = bn_gamma.reshape(Cout, 1)
    beta = bn_beta.reshape(Cout, 1)

    flops = 2 * P * Cin * Cout
    bytes_accessed = 4 * (Cin * P + Cout * Cin + Cout * P + Cin + 2 * Cout)

    vmem = pl.BlockSpec(memory_space=pltpu.MemorySpace.VMEM)
    out = pl.pallas_call(
        se_conv_bn_kernel,
        out_shape=jax.ShapeDtypeStruct((Cout, P), jnp.float32),
        in_specs=[vmem, vmem, vmem, vmem, vmem],
        out_specs=vmem,
        cost_estimate=pl.CostEstimate(
            flops=flops,
            transcendentals=Cin + Cout,
            bytes_accessed=bytes_accessed,
        ),
        compiler_params=pltpu.CompilerParams(vmem_limit_bytes=8 * 1024 * 1024),
    )(s_row, x_cm, w_mat, gamma, beta)

    # (Cout, P) -> (N, Cout, H, W): free reshape, no transpose.
    return out.reshape(N, Cout, H, W)


def reference(x143, x139, conv_w, bn_gamma, bn_beta):
    """Pure-JAX reference mirroring the PyTorch module (BN in training mode)."""
    gate = jax.nn.sigmoid(x143)                     # (1, Cin, 1, 1)
    xg = gate * x139                                # (1, Cin, H, W)
    y = jax.lax.conv_general_dilated(
        xg, conv_w, window_strides=(1, 1), padding="VALID",
        dimension_numbers=("NCHW", "OIHW", "NCHW"))
    mean = jnp.mean(y, axis=(0, 2, 3), keepdims=True)
    var = jnp.mean((y - mean) ** 2, axis=(0, 2, 3), keepdims=True)
    y_hat = (y - mean) * jax.lax.rsqrt(var + EPS)
    return y_hat * bn_gamma.reshape(1, -1, 1, 1) + bn_beta.reshape(1, -1, 1, 1)


if __name__ == "__main__":
    N, Cin, H, W = 1, 576, 14, 14
    Cout = 96

    key = jax.random.PRNGKey(0)
    k1, k2, k3 = jax.random.split(key, 3)

    x139 = jax.random.normal(k1, (N, Cin, H, W), dtype=jnp.float32)
    x143 = jax.random.normal(k2, (N, Cin, 1, 1), dtype=jnp.float32)

    # Conv2d(576, 96, kernel_size=1, bias=False) weight, deterministic init.
    fan_in = Cin
    conv_w = jax.random.uniform(
        k3, (Cout, Cin, 1, 1), dtype=jnp.float32,
        minval=-(fan_in ** -0.5), maxval=(fan_in ** -0.5))
    # BatchNorm2d(96) default affine init: weight=1, bias=0.
    bn_gamma = jnp.ones((Cout,), dtype=jnp.float32)
    bn_beta = jnp.zeros((Cout,), dtype=jnp.float32)

    out = se_conv_bn(x143, x139, conv_w, bn_gamma, bn_beta)
    jax.block_until_ready(out)

    ref = reference(x143, x139, conv_w, bn_gamma, bn_beta)
    assert out.shape == (N, Cout, H, W)
    assert jnp.allclose(out, ref, atol=1e-4, rtol=1e-4)

    print("KERNEL_OK")
</pallas_src>

<mosaic_0001>
module attributes {stable_mosaic.version = 11 : i64} {
  func.func @se_conv_bn_kernel(%arg0: memref<1x576xf32, #tpu.memory_space<vmem>>, %arg1: memref<576x196xf32, #tpu.memory_space<vmem>>, %arg2: memref<96x576xf32, #tpu.memory_space<vmem>>, %arg3: memref<96x1xf32, #tpu.memory_space<vmem>>, %arg4: memref<96x1xf32, #tpu.memory_space<vmem>>, %arg5: memref<96x196xf32, #tpu.memory_space<vmem>>) attributes {dimension_semantics = [], scalar_prefetch = 0 : i64, scratch_operands = 0 : i64, tpu.core_type = #tpu.core_type<tc>} {
    %c0 = arith.constant 0 : index
    %c0_0 = arith.constant 0 : index
    %0 = vector.load %arg0[%c0, %c0_0] : memref<1x576xf32, #tpu.memory_space<vmem>>, vector<1x576xf32>
    %1 = arith.negf %0 : vector<1x576xf32>
    %2 = math.exp %1 : vector<1x576xf32>
    %cst = arith.constant 1.000000e+00 : f32
    %3 = vector.broadcast %cst : f32 to vector<1x576xf32>
    %4 = arith.addf %3, %2 : vector<1x576xf32>
    %5 = arith.divf %3, %4 : vector<1x576xf32>
    %c0_1 = arith.constant 0 : index
    %c0_2 = arith.constant 0 : index
    %6 = vector.load %arg2[%c0_1, %c0_2] : memref<96x576xf32, #tpu.memory_space<vmem>>, vector<96x576xf32>
    %7 = vector.broadcast %5 : vector<1x576xf32> to vector<96x576xf32>
    %8 = arith.mulf %6, %7 : vector<96x576xf32>
    %c0_3 = arith.constant 0 : index
    %c0_4 = arith.constant 0 : index
    %9 = vector.load %arg1[%c0_3, %c0_4] : memref<576x196xf32, #tpu.memory_space<vmem>>, vector<576x196xf32>
    %cst_5 = arith.constant dense<0.000000e+00> : vector<96x196xf32>
    %10 = tpu.matmul %8, %9, %cst_5 {dimension_numbers = #tpu.dot_dimension_numbers<[1], [0], [0], [1], [0, 0, 1, 1], [], []>} : vector<96x576xf32>, vector<576x196xf32>, vector<96x196xf32> -> vector<96x196xf32>
    %cst_6 = arith.constant dense<0.000000e+00> : vector<96xf32>
    %11 = vector.multi_reduction <add>, %10, %cst_6 [1] : vector<96x196xf32> to vector<96xf32>
    %12 = vector.shape_cast %11 : vector<96xf32> to vector<96x1xf32>
    %13 = arith.mulf %10, %10 : vector<96x196xf32>
    %cst_7 = arith.constant dense<0.000000e+00> : vector<96xf32>
    %14 = vector.multi_reduction <add>, %13, %cst_7 [1] : vector<96x196xf32> to vector<96xf32>
    %15 = vector.shape_cast %14 : vector<96xf32> to vector<96x1xf32>
    %cst_8 = arith.constant 0.00510204071 : f32
    %16 = vector.broadcast %cst_8 : f32 to vector<96x1xf32>
    %17 = arith.mulf %12, %16 : vector<96x1xf32>
    %cst_9 = arith.constant 0.00510204071 : f32
    %18 = vector.broadcast %cst_9 : f32 to vector<96x1xf32>
    %19 = arith.mulf %15, %18 : vector<96x1xf32>
    %20 = arith.mulf %17, %17 : vector<96x1xf32>
    %21 = arith.subf %19, %20 : vector<96x1xf32>
    %c0_10 = arith.constant 0 : index
    %c0_11 = arith.constant 0 : index
    %22 = vector.load %arg3[%c0_10, %c0_11] : memref<96x1xf32, #tpu.memory_space<vmem>>, vector<96x1xf32>
    %cst_12 = arith.constant 9.99999974E-6 : f32
    %23 = vector.broadcast %cst_12 : f32 to vector<96x1xf32>
    %24 = arith.addf %21, %23 : vector<96x1xf32>
    %25 = math.rsqrt %24 : vector<96x1xf32>
    %26 = arith.mulf %22, %25 : vector<96x1xf32>
    %c0_13 = arith.constant 0 : index
    %c0_14 = arith.constant 0 : index
    %27 = vector.load %arg4[%c0_13, %c0_14] : memref<96x1xf32, #tpu.memory_space<vmem>>, vector<96x1xf32>
    %28 = arith.mulf %17, %26 : vector<96x1xf32>
    %29 = arith.subf %27, %28 : vector<96x1xf32>
    %30 = vector.broadcast %26 : vector<96x1xf32> to vector<96x196xf32>
    %31 = arith.mulf %10, %30 : vector<96x196xf32>
    %32 = vector.broadcast %29 : vector<96x1xf32> to vector<96x196xf32>
    %33 = arith.addf %31, %32 : vector<96x196xf32>
    %c0_15 = arith.constant 0 : index
    %c0_16 = arith.constant 0 : index
    %34 = vector.load %arg5[%c0_15, %c0_16] : memref<96x196xf32, #tpu.memory_space<vmem>>, vector<96x196xf32>
    tpu.vector_store %arg5[%c0_15, %c0_16], %33 {strides = array<i32>} : memref<96x196xf32, #tpu.memory_space<vmem>>, vector<96x196xf32>,
    return
  }
}

</mosaic_0001>

<bundles_post_ra>
// kernel: tpu_custom_call.1
= control target key start
LH: loop header
LB: loop body
LE: loop exit
PB: predicated region body
PF: predicated region fallthrough
CT: control target
= control target key end

     0   :  { %s2965_s0 = inlined_call_operand.vmem [shape: f32[1,576], index: 0, kind: input, shape index: {}]   ;;  %s2966_s1 = inlined_call_operand.vmem [shape: f32[576,196], index: 1, kind: input, shape index: {}]   ;;  %s2967_s2 = inlined_call_operand.vmem [shape: f32[96,576], index: 2, kind: input, shape index: {}]   ;;  %s2968_s3 = inlined_call_operand.vmem [shape: f32[96,1], index: 3, kind: input, shape index: {}]   ;;  %s2969_s4 = inlined_call_operand.vmem [shape: f32[96,1], index: 4, kind: input, shape index: {}]   ;;  %s2970_s5 = inlined_call_operand.hbm [shape: f32[96,196], index: 5, kind: output, shape index: {}]  }
   0x1   :  { %v202_v0 = vld [vmem:[%s2966_s1 + $0xf0] sm:$0xff]  ;;  %v200_v2 = vld [vmem:[%s2966_s1 + $0xe0] sm:$0xff] }
   0x2   :  { %v234_v1 = vld [vmem:[%s2966_s1 + $0x1f0] sm:$0xff]  ;;  %1479 = vmatpush.msra.mxu2 %v202_v0  ;;  %v232_v3 = vld [vmem:[%s2966_s1 + $0x1e0] sm:$0xff]  ;;  %353 = vmatpush.msra.mxu0 %v202_v0 }
   0x3   :  { %1495 = vmatpush.msra.mxu3 %v234_v1  ;;  %v198_v4 = vld [vmem:[%s2966_s1 + $0xd0] sm:$0xff]  ;;  %406 = vmatpush.msra.mxu1 %v234_v1  ;;  %v196_v6 = vld [vmem:[%s2966_s1 + $0xc0] sm:$0xff] }
   0x4   :  { %v230_v5 = vld [vmem:[%s2966_s1 + $0x1d0] sm:$0xff]  ;;  %1480 = vmatpush.msra.mxu2 %v200_v2  ;;  %v228_v7 = vld [vmem:[%s2966_s1 + $0x1c0] sm:$0xff]  ;;  %354 = vmatpush.msra.mxu0 %v200_v2 }
   0x5   :  { %1496 = vmatpush.msra.mxu3 %v232_v3  ;;  %407 = vmatpush.msra.mxu1 %v232_v3  ;;  %v194_v8 = vld [vmem:[%s2966_s1 + $0xb0] sm:$0xff]  ;;  %v192_v10 = vld [vmem:[%s2966_s1 + $0xa0] sm:$0xff] }
   0x6   :  { %1481 = vmatpush.msra.mxu2 %v198_v4  ;;  %v226_v9 = vld [vmem:[%s2966_s1 + $0x1b0] sm:$0xff]  ;;  %355 = vmatpush.msra.mxu0 %v198_v4  ;;  %v224_v11 = vld [vmem:[%s2966_s1 + $0x1a0] sm:$0xff] }
   0x7   :  { %1497 = vmatpush.msra.mxu3 %v230_v5  ;;  %408 = vmatpush.msra.mxu1 %v230_v5  ;;  %v190_v12 = vld [vmem:[%s2966_s1 + $0x90] sm:$0xff]  ;;  %v21_v14 = vld [vmem:[%s2965_s0] sm:$0x1f] }
   0x8   :  { %1482 = vmatpush.msra.mxu2 %v196_v6  ;;  %356 = vmatpush.msra.mxu0 %v196_v6  ;;  %v222_v13 = vld [vmem:[%s2966_s1 + $0x190] sm:$0xff]  ;;  %v1454_v15 = vmul.f32 -1.442695, %v21_v14  ;;  %v188_v16 = vld [vmem:[%s2966_s1 + $0x80] sm:$0xff] }
   0x9   :  { %1498 = vmatpush.msra.mxu3 %v228_v7  ;;  %409 = vmatpush.msra.mxu1 %v228_v7  ;;  %v220_v17 = vld [vmem:[%s2966_s1 + $0x180] sm:$0xff] }
   0xa   :  { %1483 = vmatpush.msra.mxu2 %v194_v8  ;;  %357 = vmatpush.msra.mxu0 %v194_v8  ;;  %1518 = vpow2.f32 %v1454_v15 }
   0xb   :  { %1499 = vmatpush.msra.mxu3 %v226_v9  ;;  %410 = vmatpush.msra.mxu1 %v226_v9 }
   0xc   :  { %1484 = vmatpush.msra.mxu2 %v192_v10  ;;  %358 = vmatpush.msra.mxu0 %v192_v10 }
   0xd   :  { %1500 = vmatpush.msra.mxu3 %v224_v11  ;;  %411 = vmatpush.msra.mxu1 %v224_v11 }
   0xe   :  { %1485 = vmatpush.msra.mxu2 %v190_v12 }
   0xf   :  { %1501 = vmatpush.msra.mxu3 %v222_v13 }
  0x10   :  { %10 = vsyncpa [#allocation3], 0  ;;  %v186_v18 = vld [vmem:[%s2966_s1 + $0x70] sm:$0xff]  ;;  %359 = vmatpush.msra.mxu0 %v190_v12  ;;  %412 = vmatpush.msra.mxu1 %v222_v13  ;;  %v184_v20 = vld [vmem:[%s2966_s1 + $0x60] sm:$0xff]  ;;  %v1519_v24 = vpop.eup %1518  ;;  %vm316_vm4 = vcmask 523264   ;;  %vm883_vm5 = vcmask 556032  }
  0x11   :  { %v218_v19 = vld [vmem:[%s2966_s1 + $0x170] sm:$0xff]  ;;  %1486 = vmatpush.msra.mxu2 %v188_v16  ;;  %1502 = vmatpush.msra.mxu3 %v220_v17  ;;  %v216_v21 = vld [vmem:[%s2966_s1 + $0x160] sm:$0xff]  ;;  %v25_v27 = vadd.f32 1.0, %v1519_v24  ;;  %v203_v46 = vld [vmem:[%s2966_s1 + $0xf8] sm:$0xff]  ;;  %s1442_s6 = sshll.u32 %s2970_s5, 4  ;;  %s1574_s7 = smov 256   ;;  %s1443_s6 = int_to_ptr.hbm [resolvable:$true] %s1442_s6 }
  0x12   :  { %360 = vmatpush.msra.mxu0 %v188_v16  ;;  %413 = vmatpush.msra.mxu1 %v220_v17  ;;  %v182_v22 = vld [vmem:[%s2966_s1 + $0x50] sm:$0xff]  ;;  %v180_v25 = vld [vmem:[%s2966_s1 + $0x40] sm:$0xff]  ;;  %v201_v52 = vld [vmem:[%s2966_s1 + $0xe8] sm:$0xff]  ;;  %s1575_s8 = smov 16  }
  0x13   :  { %1487 = vmatpush.msra.mxu2 %v186_v18  ;;  %1503 = vmatpush.msra.mxu3 %v218_v19  ;;  %v214_v23 = vld [vmem:[%s2966_s1 + $0x150] sm:$0xff]  ;;  %v212_v26 = vld [vmem:[%s2966_s1 + $0x140] sm:$0xff]  ;;  %1520 = vrcp.f32 %v25_v27  ;;  %v37_v40 = vand.u32 2147483648, %v25_v27  ;;  %vm31_vm0 = vweird.f32 %v25_v27  ;;  %v35_v42 = vand.u32 2147483647, %v25_v27  ;;  %v199_v57 = vld [vmem:[%s2966_s1 + $0xd8] sm:$0xff] }
  0x14   :  { %361 = vmatpush.msra.mxu0 %v186_v18  ;;  %414 = vmatpush.msra.mxu1 %v218_v19  ;;  %v178_v28 = vld [vmem:[%s2966_s1 + $0x30] sm:$0xff]  ;;  %v176_v30 = vld [vmem:[%s2966_s1 + $0x20] sm:$0xff]  ;;  %v72_v0 = vld [vmem:[%s2967_s2 + $0xf8] sm:$0xff] }
  0x15   :  { %1488 = vmatpush.msra.mxu2 %v184_v20  ;;  %1504 = vmatpush.msra.mxu3 %v216_v21  ;;  %v210_v29 = vld [vmem:[%s2966_s1 + $0x130] sm:$0xff]  ;;  %v208_v31 = vld [vmem:[%s2966_s1 + $0x120] sm:$0xff]  ;;  %v38_v51 = vor.u32 1.1754944e-38, %v37_v40  ;;  %vm36_vm3 = vcmp.eq.f32.partialorder %v35_v42, 8.507059e+37  ;;  %v197_v1 = vld [vmem:[%s2966_s1 + $0xc8] sm:$0xff] }
  0x16   :  { %362 = vmatpush.msra.mxu0 %v184_v20  ;;  %415 = vmatpush.msra.mxu1 %v216_v21  ;;  %v174_v32 = vld [vmem:[%s2966_s1 + $0x10] sm:$0xff]  ;;  %v172_v35 = vld [vmem:[%s2966_s1] sm:$0xff]  ;;  %v42_v5 = vld [vmem:[%s2967_s2 + $0x8] sm:$0xff] }
  0x17   :  { %1489 = vmatpush.msra.mxu2 %v182_v22  ;;  %1505 = vmatpush.msra.mxu3 %v214_v23  ;;  %v206_v33 = vld [vmem:[%s2966_s1 + $0x110] sm:$0xff]  ;;  %v204_v36 = vld [vmem:[%s2966_s1 + $0x100] sm:$0xff]  ;;  %v76_v9 = vld [vmem:[%s2967_s2 + $0x118] sm:$0xff] }
  0x18   :  { %363 = vmatpush.msra.mxu0 %v182_v22  ;;  %416 = vmatpush.msra.mxu1 %v214_v23  ;;  %v266_v38 = vld [vmem:[%s2966_s1 + $0x2f0] sm:$0xff]  ;;  %v264_v43 = vld [vmem:[%s2966_s1 + $0x2e0] sm:$0xff]  ;;  %v195_v15 = vld [vmem:[%s2966_s1 + $0xb8] sm:$0xff] }
  0x19   :  { %1490 = vmatpush.msra.mxu2 %v180_v25  ;;  %1506 = vmatpush.msra.mxu3 %v212_v26  ;;  %v1521_v34 = vpop.eup %1520  ;;  %v298_v39 = vld [vmem:[%s2966_s1 + $0x3f0] sm:$0xff]  ;;  %v296_v44 = vld [vmem:[%s2966_s1 + $0x3e0] sm:$0xff]  ;;  %v46_v17 = vld [vmem:[%s2967_s2 + $0x28] sm:$0xff] }
  0x1a   :  { %364 = vmatpush.msra.mxu0 %v180_v25  ;;  %417 = vmatpush.msra.mxu1 %v212_v26  ;;  %v27_v37 = vmul.f32 %v1521_v34, %v25_v27  ;;  %vm32_vm1 = vweird.f32 %v1521_v34  ;;  %v314_v45 = vld [vmem:[%s2966_s1 + $0x470] sm:$0xff]  ;;  %v312_v53 = vld [vmem:[%s2966_s1 + $0x460] sm:$0xff]  ;;  %v193_v21 = vld [vmem:[%s2966_s1 + $0xa8] sm:$0xff] }
  0x1b   :  { %1491 = vmatpush.msra.mxu2 %v178_v28  ;;  %1507 = vmatpush.msra.mxu3 %v210_v29  ;;  %v262_v48 = vld [vmem:[%s2966_s1 + $0x2d0] sm:$0xff]  ;;  %vm1729_vm2 = vmor %vm31_vm0, %vm32_vm1  ;;  %v260_v55 = vld [vmem:[%s2966_s1 + $0x2c0] sm:$0xff] }
  0x1c   :  { %365 = vmatpush.msra.mxu0 %v178_v28  ;;  %418 = vmatpush.msra.mxu1 %v210_v29  ;;  %v28_v41 = vsub.f32 1.0, %v27_v37  ;;  %v294_v49 = vld [vmem:[%s2966_s1 + $0x3d0] sm:$0xff]  ;;  %v292_v56 = vld [vmem:[%s2966_s1 + $0x3c0] sm:$0xff]  ;;  %v191_v27 = vld [vmem:[%s2966_s1 + $0x98] sm:$0xff] }
  0x1d   :  { %1492 = vmatpush.msra.mxu2 %v176_v30  ;;  %1508 = vmatpush.msra.mxu3 %v208_v31  ;;  %v310_v58 = vld [vmem:[%s2966_s1 + $0x450] sm:$0xff]  ;;  %v41_v4 = vld [vmem:[%s2967_s2] sm:$0xff]  ;;  %v187_v40 = vld [vmem:[%s2966_s1 + $0x78] sm:$0xff] }
  0x1e   :  { %366 = vmatpush.msra.mxu0 %v176_v30  ;;  %419 = vmatpush.msra.mxu1 %v208_v31  ;;  %v29_v47 = vmul.f32 %v1521_v34, %v28_v41  ;;  %v258_v60 = vld [vmem:[%s2966_s1 + $0x2b0] sm:$0xff]  ;;  %v256_v6 = vld [vmem:[%s2966_s1 + $0x2a0] sm:$0xff] }
  0x1f   :  { %1493 = vmatpush.msra.mxu2 %v174_v32  ;;  %1509 = vmatpush.msra.mxu3 %v206_v33  ;;  %v290_v61 = vld [vmem:[%s2966_s1 + $0x3b0] sm:$0xff]  ;;  %v288_v12 = vld [vmem:[%s2966_s1 + $0x3a0] sm:$0xff] }
  0x20   :  { %367 = vmatpush.msra.mxu0 %v174_v32  ;;  %420 = vmatpush.msra.mxu1 %v206_v33  ;;  %v30_v54 = vadd.f32 %v1521_v34, %v29_v47  ;;  %v71_v63 = vld [vmem:[%s2967_s2 + $0xf0] sm:$0xff]  ;;  %v77_v14 = vld [vmem:[%s2967_s2 + $0x120] sm:$0xff]  ;;  %v82_v33 = vld [vmem:[%s2967_s2 + $0x148] sm:$0xff] }
  0x21   :  { %1494 = vmatpush.msra.mxu2 %v172_v35  ;;  %1510 = vmatpush.msra.mxu3 %v204_v36  ;;  %v254_v13 = vld [vmem:[%s2966_s1 + $0x290] sm:$0xff]  ;;  %v308_v16 = vld [vmem:[%s2966_s1 + $0x440] sm:$0xff] }
  0x22   :  { %368 = vmatpush.msra.mxu0 %v172_v35  ;;  %421 = vmatpush.msra.mxu1 %v204_v36  ;;  %v34_v59 = vsel %vm1729_vm2, %v1521_v34, %v30_v54  ;;  %v286_v18 = vld [vmem:[%s2966_s1 + $0x390] sm:$0xff]  ;;  %v252_v19 = vld [vmem:[%s2966_s1 + $0x280] sm:$0xff]  ;;  %v189_v34 = vld [vmem:[%s2966_s1 + $0x88] sm:$0xff] }
  0x23   :  { %459 = vmatpush.msrb.mxu2 %v266_v38  ;;  %512 = vmatpush.msrb.mxu3 %v298_v39  ;;  %v1759_v62 = vsel %vm36_vm3, %v38_v51, %v34_v59  ;;  %v47_v20 = vld [vmem:[%s2967_s2 + $0x30] sm:$0xff]  ;;  %v284_v23 = vld [vmem:[%s2966_s1 + $0x380] sm:$0xff]  ;;  %v52_v39 = vld [vmem:[%s2967_s2 + $0x58] sm:$0xff] }
  0x24   :  { %573 = vmatpush.msrb.mxu0 %v314_v45  ;;  %618 = vmatpush.msrb.mxu1 %v203_v46  ;;  %v1771_v2 = vperm.slane %v1759_v62, 0  ;;  %v1774_v3 = vperm.slane %v1759_v62, 1  ;;  %v306_v22 = vld [vmem:[%s2966_s1 + $0x430] sm:$0xff]  ;;  %v81_v30 = vld [vmem:[%s2967_s2 + $0x140] sm:$0xff]  ;;  %v185_v46 = vld [vmem:[%s2966_s1 + $0x68] sm:$0xff] }
  0x25   :  { %460 = vmatpush.msrb.mxu2 %v264_v43  ;;  %513 = vmatpush.msrb.mxu3 %v296_v44  ;;  %v250_v24 = vld [vmem:[%s2966_s1 + $0x270] sm:$0xff]  ;;  %v248_v32 = vld [vmem:[%s2966_s1 + $0x260] sm:$0xff]  ;;  %v86_v51 = vld [vmem:[%s2967_s2 + $0x168] sm:$0xff] }
  0x26   :  { %619 = vmatpush.msrb.mxu1 %v201_v52  ;;  %574 = vmatpush.msrb.mxu0 %v312_v53  ;;  %v1786_v7 = vmul.f32 %v1771_v2, %v71_v63  ;;  %v1789_v8 = vmul.f32 %v1774_v3, %v72_v0  ;;  %v1795_v10 = vmul.f32 %v1771_v2, %v41_v4  ;;  %v282_v31 = vld [vmem:[%s2966_s1 + $0x370] sm:$0xff]  ;;  %v304_v35 = vld [vmem:[%s2966_s1 + $0x420] sm:$0xff]  ;;  %v183_v53 = vld [vmem:[%s2966_s1 + $0x58] sm:$0xff] }
  0x27   :  { %461 = vmatpush.msrb.mxu2 %v262_v48  ;;  %514 = vmatpush.msrb.mxu3 %v294_v49  ;;  %v1798_v11 = vmul.f32 %v1774_v3, %v42_v5  ;;  %v1844_v25 = vmul.f32 %v1771_v2, %v76_v9  ;;  %v1847_v26 = vmul.f32 %v1774_v3, %v77_v14  ;;  %v51_v36 = vld [vmem:[%s2967_s2 + $0x50] sm:$0xff]  ;;  %v280_v37 = vld [vmem:[%s2966_s1 + $0x360] sm:$0xff]  ;;  %v181_v59 = vld [vmem:[%s2966_s1 + $0x48] sm:$0xff] }
  0x28   :  { %620 = vmatpush.msrb.mxu1 %v199_v57  ;;  %575 = vmatpush.msrb.mxu0 %v310_v58  ;;  %v1853_v28 = vmul.f32 %v1771_v2, %v46_v17  ;;  %v1856_v29 = vmul.f32 %v1774_v3, %v47_v20  ;;  %v246_v38 = vld [vmem:[%s2966_s1 + $0x250] sm:$0xff]  ;;  %v244_v43 = vld [vmem:[%s2966_s1 + $0x240] sm:$0xff]  ;;  %v1905_v44 = vmul.f32 %v1771_v2, %v81_v30  ;;  %v56_v57 = vld [vmem:[%s2967_s2 + $0x78] sm:$0xff] }
  0x29   :  { %462 = vmatpush.msrb.mxu2 %v260_v55  ;;  %515 = vmatpush.msrb.mxu3 %v292_v56  ;;  %v302_v41 = vld [vmem:[%s2966_s1 + $0x410] sm:$0xff]  ;;  %v1908_v45 = vmul.f32 %v1774_v3, %v82_v33  ;;  %v1914_v47 = vmul.f32 %v1771_v2, %v51_v36  ;;  %v1917_v48 = vmul.f32 %v1774_v3, %v52_v39  ;;  %v276_v49 = vld [vmem:[%s2966_s1 + $0x340] sm:$0xff]  ;;  %v235_v14 = vld [vmem:[%s2966_s1 + $0x1f8] sm:$0xff] }
  0x2a   :  { %621 = vmatpush.msrb.mxu1 %v197_v1  ;;  %387 = vmatmul.f32.vlgmr.msra.gmra.mxu2 %v1786_v7  ;;  %v278_v42 = vld [vmem:[%s2966_s1 + $0x350] sm:$0xff]  ;;  %v240_v55 = vld [vmem:[%s2966_s1 + $0x220] sm:$0xff]  ;;  %v1963_v63 = vmul.f32 %v1771_v2, %v86_v51  ;;  %v179_v1 = vld [vmem:[%s2966_s1 + $0x38] sm:$0xff]  ;;  %v1972_v4 = vmul.f32 %v1771_v2, %v56_v57  ;;  %v2113_v57 = vperm.slane %v1759_v62, 4 }
  0x2b   :  { %463 = vmatpush.msrb.mxu2 %v258_v60  ;;  %516 = vmatpush.msrb.mxu3 %v290_v61  ;;  %v242_v50 = vld [vmem:[%s2966_s1 + $0x230] sm:$0xff]  ;;  %v300_v56 = vld [vmem:[%s2966_s1 + $0x400] sm:$0xff]  ;;  %v267_v20 = vld [vmem:[%s2966_s1 + $0x2f8] sm:$0xff] }
  0x2c   :  { %440 = vmatmul.f32.vlgmr.msra.gmra.mxu3 %v1789_v8  ;;  %369 = vmatmul.f32.vlgmr.msra.gmra.mxu0 %v1795_v10  ;;  %v87_v52 = vld [vmem:[%s2967_s2 + $0x170] sm:$0xff]  ;;  %v57_v58 = vld [vmem:[%s2967_s2 + $0x80] sm:$0xff]  ;;  %v173_v30 = vld [vmem:[%s2966_s1 + $0x8] sm:$0xff] }
  0x2d   :  { %464 = vmatpush.msrb.mxu2 %v256_v6  ;;  %422 = vmatmul.f32.vlgmr.msra.gmra.mxu1 %v1798_v11  ;;  %v274_v54 = vld [vmem:[%s2966_s1 + $0x330] sm:$0xff]  ;;  %v272_v60 = vld [vmem:[%s2966_s1 + $0x320] sm:$0xff]  ;;  %v1966_v0 = vmul.f32 %v1774_v3, %v87_v52  ;;  %v1975_v5 = vmul.f32 %v1774_v3, %v57_v58  ;;  %v231_v33 = vld [vmem:[%s2966_s1 + $0x1d8] sm:$0xff] }
  0x2e   :  { %517 = vmatpush.msrb.mxu3 %v288_v12  ;;  %622 = vmatpush.msrb.mxu1 %v195_v15  ;;  %v238_v61 = vld [vmem:[%s2966_s1 + $0x210] sm:$0xff]  ;;  %v236_v12 = vld [vmem:[%s2966_s1 + $0x200] sm:$0xff]  ;;  %v177_v15 = vld [vmem:[%s2966_s1 + $0x28] sm:$0xff] }
  0x2f   :  { %465 = vmatpush.msrb.mxu2 %v254_v13  ;;  %576 = vmatpush.msrb.mxu0 %v308_v16  ;;  %v91_v6 = vld [vmem:[%s2967_s2 + $0x190] sm:$0xff]  ;;  %v92_v13 = vld [vmem:[%s2967_s2 + $0x198] sm:$0xff]  ;;  %v61_v16 = vld [vmem:[%s2967_s2 + $0xa0] sm:$0xff] }
  0x30   :  { %518 = vmatpush.msrb.mxu3 %v286_v18  ;;  %623 = vmatpush.msrb.mxu1 %v193_v21  ;;  %v270_v9 = vld [vmem:[%s2966_s1 + $0x310] sm:$0xff]  ;;  %v268_v17 = vld [vmem:[%s2966_s1 + $0x300] sm:$0xff]  ;;  %v299_v18 = vld [vmem:[%s2966_s1 + $0x3f8] sm:$0xff] }
  0x31   :  { %466 = vmatpush.msrb.mxu2 %v252_v19  ;;  %577 = vmatpush.msrb.mxu0 %v306_v22  ;;  %v62_v19 = vld [vmem:[%s2967_s2 + $0xa8] sm:$0xff]  ;;  %v175_v21 = vld [vmem:[%s2966_s1 + $0x18] sm:$0xff]  ;;  %v43_v52 = vld [vmem:[%s2967_s2 + $0x10] sm:$0xff] }
  0x32   :  { %519 = vmatpush.msrb.mxu3 %v284_v23  ;;  %624 = vmatpush.msrb.mxu1 %v191_v27  ;;  %v233_v22 = vld [vmem:[%s2966_s1 + $0x1e8] sm:$0xff]  ;;  %v2021_v23 = vmul.f32 %v1771_v2, %v91_v6  ;;  %v263_v36 = vld [vmem:[%s2966_s1 + $0x2d8] sm:$0xff] }
  0x33   :  { %467 = vmatpush.msrb.mxu2 %v250_v24  ;;  %578 = vmatpush.msrb.mxu0 %v304_v35  ;;  %v2024_v24 = vmul.f32 %v1774_v3, %v92_v13  ;;  %v265_v27 = vld [vmem:[%s2966_s1 + $0x2e8] sm:$0xff]  ;;  %v96_v35 = vld [vmem:[%s2967_s2 + $0x1b8] sm:$0xff] }
  0x34   :  { %390 = vmatmul.f32.gmra.mxu2 %v1844_v25  ;;  %443 = vmatmul.f32.gmra.mxu3 %v1847_v26  ;;  %v66_v39 = vld [vmem:[%s2967_s2 + $0xc8] sm:$0xff]  ;;  %v48_v6 = vld [vmem:[%s2967_s2 + $0x38] sm:$0xff] }
  0x35   :  { %372 = vmatmul.f32.gmra.mxu0 %v1853_v28  ;;  %425 = vmatmul.f32.gmra.mxu1 %v1856_v29  ;;  %v293_v58 = vld [vmem:[%s2966_s1 + $0x3c8] sm:$0xff]  ;;  %v223_v13 = vld [vmem:[%s2966_s1 + $0x198] sm:$0xff] }
  0x36   :  { %520 = vmatpush.msrb.mxu3 %v282_v31  ;;  %468 = vmatpush.msrb.mxu2 %v248_v32  ;;  %v2033_v31 = vmul.f32 %v1771_v2, %v61_v16  ;;  %v2036_v32 = vmul.f32 %v1774_v3, %v62_v19  ;;  %v255_v16 = vld [vmem:[%s2966_s1 + $0x298] sm:$0xff] }
  0x37   :  { %625 = vmatpush.msrb.mxu1 %v189_v34  ;;  %579 = vmatpush.msrb.mxu0 %v302_v41  ;;  %v315_v34 = vld [vmem:[%s2966_s1 + $0x478] sm:$0xff]  ;;  %v67_v41 = vld [vmem:[%s2967_s2 + $0xd0] sm:$0xff] }
  0x38   :  { %521 = vmatpush.msrb.mxu3 %v280_v37  ;;  %469 = vmatpush.msrb.mxu2 %v246_v38  ;;  %v297_v37 = vld [vmem:[%s2966_s1 + $0x3e8] sm:$0xff]  ;;  %v97_v38 = vld [vmem:[%s2967_s2 + $0x1c0] sm:$0xff]  ;;  %v2085_v51 = vmul.f32 %v1774_v3, %v67_v41  ;;  %v59_v41 = vld [vmem:[%s2967_s2 + $0x90] sm:$0xff] }
  0x39   :  { %626 = vmatpush.msrb.mxu1 %v187_v40  ;;  %580 = vmatpush.msrb.mxu0 %v300_v56  ;;  %v229_v40 = vld [vmem:[%s2966_s1 + $0x1c8] sm:$0xff]  ;;  %v44_v56 = vld [vmem:[%s2967_s2 + $0x18] sm:$0xff] }
  0x3a   :  { %522 = vmatpush.msrb.mxu3 %v278_v42  ;;  %470 = vmatpush.msrb.mxu2 %v244_v43  ;;  %v261_v42 = vld [vmem:[%s2966_s1 + $0x2c8] sm:$0xff]  ;;  %v295_v43 = vld [vmem:[%s2966_s1 + $0x3d8] sm:$0xff] }
  0x3b   :  { %627 = vmatpush.msrb.mxu1 %v185_v46  ;;  %777 = vmatpush.msra.mxu0 %v299_v18  ;;  %v2076_v46 = vmul.f32 %v1771_v2, %v96_v35 }
  0x3c   :  { %393 = vmatmul.f32.gmra.mxu2 %v1905_v44  ;;  %446 = vmatmul.f32.gmra.mxu3 %v1908_v45 }
  0x3d   :  { %375 = vmatmul.f32.gmra.mxu0 %v1914_v47  ;;  %428 = vmatmul.f32.gmra.mxu1 %v1917_v48 }
  0x3e   :  { %523 = vmatpush.msrb.mxu3 %v276_v49  ;;  %471 = vmatpush.msrb.mxu2 %v242_v50  ;;  %v2079_v49 = vmul.f32 %v1774_v3, %v97_v38  ;;  %v2082_v50 = vmul.f32 %v1771_v2, %v66_v39  ;;  %v227_v2 = vld [vmem:[%s2966_s1 + $0x1b8] sm:$0xff]  ;;  %v313_v3 = vld [vmem:[%s2966_s1 + $0x468] sm:$0xff] }
  0x3f   :  { %628 = vmatpush.msrb.mxu1 %v183_v53  ;;  %778 = vmatpush.msra.mxu0 %v297_v37  ;;  %v2093_v53 = vperm.slane %v1759_v62, 2  ;;  %v58_v37 = vld [vmem:[%s2967_s2 + $0x88] sm:$0xff]  ;;  %v219_v38 = vld [vmem:[%s2966_s1 + $0x178] sm:$0xff] }
  0x40   :  { %524 = vmatpush.msrb.mxu3 %v274_v54  ;;  %472 = vmatpush.msrb.mxu2 %v240_v55  ;;  %v2096_v54 = vperm.slane %v1759_v62, 3  ;;  %v259_v55 = vld [vmem:[%s2966_s1 + $0x2b8] sm:$0xff]  ;;  %v309_v39 = vld [vmem:[%s2966_s1 + $0x448] sm:$0xff] }
  0x41   :  { %629 = vmatpush.msrb.mxu1 %v181_v59  ;;  %779 = vmatpush.msra.mxu0 %v295_v43  ;;  %v225_v59 = vld [vmem:[%s2966_s1 + $0x1a8] sm:$0xff]  ;;  %v2163_v18 = vmul.f32 %v2093_v53, %v48_v6  ;;  %v307_v6 = vld [vmem:[%s2966_s1 + $0x438] sm:$0xff] }
  0x42   :  { %525 = vmatpush.msrb.mxu3 %v272_v60  ;;  %473 = vmatpush.msrb.mxu2 %v238_v61  ;;  %v45_v60 = vld [vmem:[%s2967_s2 + $0x20] sm:$0xff]  ;;  %v2125_v61 = vmul.f32 %v2093_v53, %v43_v52  ;;  %v2128_v62 = vmul.f32 %v2096_v54, %v44_v56  ;;  %v217_v43 = vld [vmem:[%s2966_s1 + $0x168] sm:$0xff]  ;;  %v60_v52 = vld [vmem:[%s2967_s2 + $0x98] sm:$0xff] }
  0x43   :  { %630 = vmatpush.msrb.mxu1 %v179_v1  ;;  %780 = vmatpush.msra.mxu0 %v293_v58  ;;  %v2131_v1 = vmul.f32 %v2113_v57, %v45_v60  ;;  %v249_v56 = vld [vmem:[%s2966_s1 + $0x268] sm:$0xff]  ;;  %v283_v58 = vld [vmem:[%s2966_s1 + $0x378] sm:$0xff] }
  0x44   :  { %396 = vmatmul.f32.gmra.mxu2 %v1963_v63  ;;  %449 = vmatmul.f32.gmra.mxu3 %v1966_v0  ;;  %v64_v60 = vld [vmem:[%s2967_s2 + $0xb8] sm:$0xff] }
  0x45   :  { %378 = vmatmul.f32.gmra.mxu0 %v1972_v4  ;;  %431 = vmatmul.f32.gmra.mxu1 %v1975_v5 }
  0x46   :  { %526 = vmatpush.msrb.mxu3 %v270_v9  ;;  %474 = vmatpush.msrb.mxu2 %v236_v12  ;;  %v257_v9 = vld [vmem:[%s2966_s1 + $0x2a8] sm:$0xff]  ;;  %v291_v12 = vld [vmem:[%s2966_s1 + $0x3b8] sm:$0xff] }
  0x47   :  { %631 = vmatpush.msrb.mxu1 %v177_v15  ;;  %v311_v15 = vld [vmem:[%s2966_s1 + $0x458] sm:$0xff]  ;;  %781 = vmatpush.msra.mxu0 %v291_v12  ;;  %v65_v12 = vld [vmem:[%s2967_s2 + $0xc0] sm:$0xff] }
  0x48   :  { %671 = vmatpush.msra.mxu2 %v235_v14  ;;  %527 = vmatpush.msrb.mxu3 %v268_v17  ;;  %v49_v14 = vld [vmem:[%s2967_s2 + $0x40] sm:$0xff]  ;;  %v50_v17 = vld [vmem:[%s2967_s2 + $0x48] sm:$0xff] }
  0x49   :  { %632 = vmatpush.msrb.mxu1 %v175_v21  ;;  %v2169_v19 = vmul.f32 %v2113_v57, %v50_v17  ;;  %v221_v21 = vld [vmem:[%s2966_s1 + $0x188] sm:$0xff] }
  0x4a   :  { %724 = vmatpush.msra.mxu3 %v267_v20  ;;  %672 = vmatpush.msra.mxu2 %v233_v22  ;;  %v289_v20 = vld [vmem:[%s2966_s1 + $0x3a8] sm:$0xff] }
  0x4b   :  { %633 = vmatpush.msrb.mxu1 %v173_v30  ;;  %v253_v22 = vld [vmem:[%s2966_s1 + $0x288] sm:$0xff]  ;;  %782 = vmatpush.msra.mxu0 %v289_v20  ;;  %v68_v20 = vld [vmem:[%s2967_s2 + $0xd8] sm:$0xff] }
  0x4c   :  { %725 = vmatpush.msra.mxu3 %v265_v27  ;;  %399 = vmatmul.f32.gmra.mxu2 %v2021_v23  ;;  %v53_v27 = vld [vmem:[%s2967_s2 + $0x60] sm:$0xff]  ;;  %v54_v30 = vld [vmem:[%s2967_s2 + $0x68] sm:$0xff] }
  0x4d   :  { %452 = vmatmul.f32.gmra.mxu3 %v2024_v24  ;;  %381 = vmatmul.f32.gmra.mxu0 %v2033_v31  ;;  %v2198_v35 = vmul.f32 %v2093_v53, %v53_v27  ;;  %v245_v17 = vld [vmem:[%s2966_s1 + $0x248] sm:$0xff] }
  0x4e   :  { %434 = vmatmul.f32.gmra.mxu1 %v2036_v32  ;;  %673 = vmatpush.msra.mxu2 %v231_v33  ;;  %v287_v33 = vld [vmem:[%s2966_s1 + $0x398] sm:$0xff]  ;;  %v70_v27 = vld [vmem:[%s2967_s2 + $0xe8] sm:$0xff] }
  0x4f   :  { %838 = vmatpush.msra.mxu1 %v315_v34  ;;  %726 = vmatpush.msra.mxu3 %v263_v36  ;;  %v55_v34 = vld [vmem:[%s2967_s2 + $0x70] sm:$0xff]  ;;  %v2201_v36 = vmul.f32 %v2096_v54, %v54_v30  ;;  %v2309_v30 = vmul.f32 %v2093_v53, %v68_v20  ;;  %v273_v20 = vld [vmem:[%s2966_s1 + $0x328] sm:$0xff] }
  0x50   :  { %674 = vmatpush.msra.mxu2 %v229_v40  ;;  %783 = vmatpush.msra.mxu0 %v287_v33  ;;  %v251_v40 = vld [vmem:[%s2966_s1 + $0x278] sm:$0xff] }
  0x51   :  { %727 = vmatpush.msra.mxu3 %v261_v42  ;;  %839 = vmatpush.msra.mxu1 %v313_v3  ;;  %v285_v42 = vld [vmem:[%s2966_s1 + $0x388] sm:$0xff]  ;;  %v2242_v3 = vmul.f32 %v2113_v57, %v60_v52 }
  0x52   :  { %675 = vmatpush.msra.mxu2 %v227_v2  ;;  %784 = vmatpush.msra.mxu0 %v285_v42  ;;  %v2236_v2 = vmul.f32 %v2093_v53, %v58_v37  ;;  %v211_v37 = vld [vmem:[%s2966_s1 + $0x138] sm:$0xff]  ;;  %v209_v42 = vld [vmem:[%s2966_s1 + $0x128] sm:$0xff] }
  0x53   :  { %728 = vmatpush.msra.mxu3 %v259_v55  ;;  %840 = vmatpush.msra.mxu1 %v311_v15  ;;  %v63_v55 = vld [vmem:[%s2967_s2 + $0xb0] sm:$0xff]  ;;  %v281_v15 = vld [vmem:[%s2966_s1 + $0x368] sm:$0xff] }
  0x54   :  { %402 = vmatmul.f32.gmra.mxu2 %v2076_v46  ;;  %785 = vmatpush.msra.mxu0 %v283_v58  ;;  %v275_v58 = vld [vmem:[%s2966_s1 + $0x338] sm:$0xff] }
  0x55   :  { %455 = vmatmul.f32.gmra.mxu3 %v2079_v49  ;;  %384 = vmatmul.f32.gmra.mxu0 %v2082_v50 }
  0x56   :  { %437 = vmatmul.f32.gmra.mxu1 %v2085_v51  ;;  %676 = vmatpush.msra.mxu2 %v225_v59  ;;  %v215_v59 = vld [vmem:[%s2966_s1 + $0x158] sm:$0xff] }
  0x57   :  { %729 = vmatpush.msra.mxu3 %v257_v9  ;;  %841 = vmatpush.msra.mxu1 %v309_v39  ;;  %v247_v9 = vld [vmem:[%s2966_s1 + $0x258] sm:$0xff] }
  0x58   :  { %677 = vmatpush.msra.mxu2 %v223_v13  ;;  %v2274_v13 = vmul.f32 %v2093_v53, %v63_v55  ;;  %786 = vmatpush.msra.mxu0 %v281_v15  ;;  %v243_v39 = vld [vmem:[%s2966_s1 + $0x238] sm:$0xff] }
  0x59   :  { %730 = vmatpush.msra.mxu3 %v255_v16  ;;  %842 = vmatpush.msra.mxu1 %v307_v6  ;;  %v213_v16 = vld [vmem:[%s2966_s1 + $0x148] sm:$0xff]  ;;  %v80_v6 = vld [vmem:[%s2967_s2 + $0x138] sm:$0xff] }
  0x5a   :  { %678 = vmatpush.msra.mxu2 %v221_v21  ;;  %v69_v21 = vld [vmem:[%s2967_s2 + $0xe0] sm:$0xff]  ;;  %v207_v15 = vld [vmem:[%s2966_s1 + $0x118] sm:$0xff] }
  0x5b   :  { %731 = vmatpush.msra.mxu3 %v253_v22  ;;  %v279_v22 = vld [vmem:[%s2966_s1 + $0x358] sm:$0xff]  ;;  %v2312_v33 = vmul.f32 %v2096_v54, %v69_v21  ;;  %v205_v21 = vld [vmem:[%s2966_s1 + $0x108] sm:$0xff] }
  0x5c   :  { %475 = vmatmul.f32.vlgmr.msrb.gmra.mxu2 %v2125_v61  ;;  %787 = vmatpush.msra.mxu0 %v279_v22  ;;  %v83_v22 = vld [vmem:[%s2967_s2 + $0x150] sm:$0xff] }
  0x5d   :  { %528 = vmatmul.f32.vlgmr.msrb.gmra.mxu3 %v2128_v62  ;;  %1455 = vmatmul.msk.f32.vlgmr.msrb.gmra.mxu0 %vm316_vm4, %v2131_v1 }
  0x5e   :  { %634 = vmatmul.f32.vlgmr.msrb.gmra.mxu1 %v1795_v10  ;;  %v2166_v10 = vmul.f32 %v2096_v54, %v49_v14  ;;  %679 = vmatpush.msra.mxu2 %v219_v38  ;;  %v2280_v14 = vmul.f32 %v2113_v57, %v65_v12  ;;  %v305_v38 = vld [vmem:[%s2966_s1 + $0x428] sm:$0xff] }
  0x5f   :  { %732 = vmatpush.msra.mxu3 %v251_v40  ;;  %v74_v40 = vld [vmem:[%s2967_s2 + $0x108] sm:$0xff]  ;;  %843 = vmatpush.msra.mxu1 %v305_v38 }
  0x60   :  { %680 = vmatpush.msra.mxu2 %v217_v43  ;;  %v75_v43 = vld [vmem:[%s2967_s2 + $0x110] sm:$0xff] }
  0x61   :  { %733 = vmatpush.msra.mxu3 %v249_v56  ;;  %v2353_v55 = vmul.f32 %v2113_v57, %v75_v43  ;;  %v241_v56 = vld [vmem:[%s2966_s1 + $0x228] sm:$0xff]  ;;  %v89_v43 = vld [vmem:[%s2967_s2 + $0x180] sm:$0xff] }
  0x62   :  { %681 = vmatpush.msra.mxu2 %v215_v59  ;;  %v78_v59 = vld [vmem:[%s2967_s2 + $0x128] sm:$0xff] }
  0x63   :  { %734 = vmatpush.msra.mxu3 %v247_v9  ;;  %v2376_v9 = vmul.f32 %v2093_v53, %v78_v59  ;;  %v2449_v59 = vmul.f32 %v2096_v54, %v89_v43 }
  0x64   :  { %478 = vmatmul.f32.gmra.mxu2 %v2163_v18 }
  0x65   :  { %531 = vmatmul.f32.gmra.mxu3 %v2166_v10  ;;  %1456 = vmatmul.msk.f32.gmra.mxu0 %vm316_vm4, %v2169_v19 }
  0x66   :  { %637 = vmatmul.f32.gmra.mxu1 %v1853_v28  ;;  %v2204_v28 = vmul.f32 %v2113_v57, %v55_v34  ;;  %682 = vmatpush.msra.mxu2 %v213_v16  ;;  %v73_v34 = vld [vmem:[%s2967_s2 + $0x100] sm:$0xff]  ;;  %v239_v16 = vld [vmem:[%s2966_s1 + $0x218] sm:$0xff] }
  0x67   :  { %735 = vmatpush.msra.mxu3 %v245_v17  ;;  %v2347_v52 = vmul.f32 %v2093_v53, %v73_v34  ;;  %v2391_v17 = vmul.f32 %v2113_v57, %v80_v6  ;;  %v85_v34 = vld [vmem:[%s2967_s2 + $0x160] sm:$0xff] }
  0x68   :  { %683 = vmatpush.msra.mxu2 %v211_v37  ;;  %v2414_v37 = vmul.f32 %v2093_v53, %v83_v22 }
  0x69   :  { %736 = vmatpush.msra.mxu3 %v243_v39  ;;  %v237_v39 = vld [vmem:[%s2966_s1 + $0x208] sm:$0xff] }
  0x6a   :  { %684 = vmatpush.msra.mxu2 %v209_v42  ;;  %v88_v42 = vld [vmem:[%s2967_s2 + $0x178] sm:$0xff] }
  0x6b   :  { %737 = vmatpush.msra.mxu3 %v241_v56  ;;  %v90_v56 = vld [vmem:[%s2967_s2 + $0x188] sm:$0xff] }
  0x6c   :  { %481 = vmatmul.f32.gmra.mxu2 %v2198_v35  ;;  %v2455_v6 = vmul.f32 %v2113_v57, %v90_v56 }
  0x6d   :  { %534 = vmatmul.f32.gmra.mxu3 %v2201_v36  ;;  %1457 = vmatmul.msk.f32.gmra.mxu0 %vm316_vm4, %v2204_v28 }
  0x6e   :  { %640 = vmatmul.f32.gmra.mxu1 %v1914_v47  ;;  %v2239_v47 = vmul.f32 %v2096_v54, %v59_v41  ;;  %v277_v41 = vld [vmem:[%s2966_s1 + $0x348] sm:$0xff]  ;;  %685 = vmatpush.msra.mxu2 %v207_v15 }
  0x6f   :  { %788 = vmatpush.msra.mxu0 %v277_v41  ;;  %738 = vmatpush.msra.mxu3 %v239_v16  ;;  %v301_v41 = vld [vmem:[%s2966_s1 + $0x408] sm:$0xff] }
  0x70   :  { %686 = vmatpush.msra.mxu2 %v205_v21  ;;  %v94_v15 = vld [vmem:[%s2967_s2 + $0x1a8] sm:$0xff] }
  0x71   :  { %789 = vmatpush.msra.mxu0 %v275_v58  ;;  %739 = vmatpush.msra.mxu3 %v237_v39  ;;  %v2446_v58 = vmul.f32 %v2093_v53, %v88_v42  ;;  %v100_v39 = vld [vmem:[%s2967_s2 + $0x1d8] sm:$0xff] }
  0x73   :  { %790 = vmatpush.msra.mxu0 %v273_v20  ;;  %v2475_v20 = vmul.f32 %v2096_v54, %v94_v15 }
  0x74   :  { %484 = vmatmul.f32.gmra.mxu2 %v2236_v2 }
  0x75   :  { %537 = vmatmul.f32.gmra.mxu3 %v2239_v47  ;;  %1458 = vmatmul.msk.f32.gmra.mxu0 %vm316_vm4, %v2242_v3 }
  0x76   :  { %643 = vmatmul.f32.gmra.mxu1 %v1972_v4  ;;  %v2277_v4 = vmul.f32 %v2096_v54, %v64_v60  ;;  %v79_v60 = vld [vmem:[%s2967_s2 + $0x130] sm:$0xff] }
  0x77   :  { %v2379_v12 = vmul.f32 %v2096_v54, %v79_v60  ;;  %v269_v60 = vld [vmem:[%s2966_s1 + $0x308] sm:$0xff] }
  0x7c   :  { %487 = vmatmul.f32.gmra.mxu2 %v2274_v13 }
  0x7d   :  { %540 = vmatmul.f32.gmra.mxu3 %v2277_v4  ;;  %1459 = vmatmul.msk.f32.gmra.mxu0 %vm316_vm4, %v2280_v14 }
  0x7e   :  { %646 = vmatmul.f32.gmra.mxu1 %v2033_v31  ;;  %v2315_v31 = vmul.f32 %v2113_v57, %v70_v27  ;;  %v84_v27 = vld [vmem:[%s2967_s2 + $0x158] sm:$0xff] }
  0x7f   :  { %v2417_v38 = vmul.f32 %v2096_v54, %v84_v27 }
  0x84   :  { %490 = vmatmul.f32.gmra.mxu2 %v2309_v30 }
  0x85   :  { %543 = vmatmul.f32.gmra.mxu3 %v2312_v33  ;;  %1460 = vmatmul.msk.f32.gmra.mxu0 %vm316_vm4, %v2315_v31 }
  0x86   :  { %649 = vmatmul.f32.gmra.mxu1 %v2082_v50  ;;  %v2350_v50 = vmul.f32 %v2096_v54, %v74_v40  ;;  %v2426_v40 = vmul.f32 %v2113_v57, %v85_v34  ;;  %v99_v34 = vld [vmem:[%s2967_s2 + $0x1d0] sm:$0xff] }
  0x87   :  { %v2504_v56 = vmul.f32 %v2096_v54, %v99_v34 }
  0x8c   :  { %493 = vmatmul.f32.gmra.mxu2 %v2347_v52 }
  0x8d   :  { %546 = vmatmul.f32.gmra.mxu3 %v2350_v50  ;;  %1461 = vmatmul.msk.f32.gmra.mxu0 %vm316_vm4, %v2353_v55 }
  0x8e   :  { %652 = vmatmul.f32.gmra.mxu1 %v1786_v7  ;;  %v303_v7 = vld [vmem:[%s2966_s1 + $0x418] sm:$0xff] }
  0x8f   :  { %844 = vmatpush.msra.mxu1 %v303_v7  ;;  %v95_v7 = vld [vmem:[%s2967_s2 + $0x1b0] sm:$0xff] }
  0x90   :  { %v2478_v21 = vmul.f32 %v2113_v57, %v95_v7 }
  0x91   :  { %845 = vmatpush.msra.mxu1 %v301_v41 }
  0x94   :  { %496 = vmatmul.f32.gmra.mxu2 %v2376_v9 }
  0x95   :  { %549 = vmatmul.f32.gmra.mxu3 %v2379_v12  ;;  %1462 = vmatmul.msk.f32.gmra.mxu0 %vm316_vm4, %v2391_v17 }
  0x96   :  { %655 = vmatmul.f32.gmra.mxu1 %v1844_v25  ;;  %v271_v25 = vld [vmem:[%s2966_s1 + $0x318] sm:$0xff] }
  0x97   :  { %791 = vmatpush.msra.mxu0 %v271_v25 }
  0x99   :  { %792 = vmatpush.msra.mxu0 %v269_v60  ;;  %v2507_v60 = vmul.f32 %v2113_v57, %v100_v39 }
  0x9c   :  { %499 = vmatmul.f32.gmra.mxu2 %v2414_v37 }
  0x9d   :  { %552 = vmatmul.f32.gmra.mxu3 %v2417_v38  ;;  %1463 = vmatmul.msk.f32.gmra.mxu0 %vm316_vm4, %v2426_v40 }
  0x9e   :  { %658 = vmatmul.f32.gmra.mxu1 %v1905_v44  ;;  %v93_v44 = vld [vmem:[%s2967_s2 + $0x1a0] sm:$0xff] }
  0x9f   :  { %v2472_v16 = vmul.f32 %v2093_v53, %v93_v44 }
  0xa4   :  { %502 = vmatmul.f32.gmra.mxu2 %v2446_v58 }
  0xa5   :  { %555 = vmatmul.f32.gmra.mxu3 %v2449_v59  ;;  %1464 = vmatmul.msk.f32.gmra.mxu0 %vm316_vm4, %v2455_v6 }
  0xa6   :  { %661 = vmatmul.f32.gmra.mxu1 %v1963_v63  ;;  %v98_v63 = vld [vmem:[%s2967_s2 + $0x1c8] sm:$0xff] }
  0xa7   :  { %v2501_v43 = vmul.f32 %v2093_v53, %v98_v63 }
  0xa9   :  { %v2480_v22 = vpop.f32.mrf.mxu0 }
  0xaa   :  { %v2482_v27 = vpop.f32.mrf.mxu1 }
  0xac   :  { %505 = vmatmul.f32.gmra.mxu2 %v2472_v16 }
  0xad   :  { %558 = vmatmul.f32.gmra.mxu3 %v2475_v20  ;;  %1465 = vmatmul.msk.f32.gmra.mxu0 %vm316_vm4, %v2478_v21  ;;  %v388_v25 = vpop.f32.mrf.mxu2 }
  0xae   :  { %664 = vmatmul.f32.gmra.mxu1 %v2021_v23 }
  0xaf   :  { %v441_v41 = vpop.f32.mrf.mxu3 }
  0xb0   :  { %v2498_v42 = vadd.f32 %v441_v41, %v388_v25 }
  0xb2   :  { %v2509_v44 = vpop.f32.mrf.mxu0  ;;  %v426_v23 = vpop.f32.mrf.mxu1 }
  0xb4   :  { %508 = vmatmul.f32.gmra.mxu2 %v2501_v43 }
  0xb5   :  { %561 = vmatmul.f32.gmra.mxu3 %v2504_v56  ;;  %1466 = vmatmul.msk.f32.gmra.mxu0 %vm316_vm4, %v2507_v60 }
  0xb6   :  { %667 = vmatmul.f32.gmra.mxu1 %v2076_v46 }
  0xb7   :  { %v391_v53 = vpop.f32.mrf.mxu2  ;;  %v444_v15 = vpop.f32.mrf.mxu3 }
  0xb8   :  { %v2516_v7 = vadd.f32 %v444_v15, %v391_v53 }
  0xba   :  { %v2518_v54 = vpop.f32.mrf.mxu0  ;;  %v2520_v57 = vpop.f32.mrf.mxu1 }
  0xbc   :  { %687 = vmatmul.f32.vlgmr.msra.gmra.mxu2 %v1798_v11 }
  0xbd   :  { %740 = vmatmul.f32.vlgmr.msra.gmra.mxu3 %v2125_v61  ;;  %793 = vmatmul.f32.vlgmr.msra.gmra.mxu0 %v2128_v62 }
  0xbe   :  { %1467 = vmatmul.msk.f32.vlgmr.msra.gmra.mxu1 %vm316_vm4, %v2131_v1 }
  0xbf   :  { %v394_v63 = vpop.f32.mrf.mxu2  ;;  %v447_v34 = vpop.f32.mrf.mxu3 }
  0xc0   :  { %v2527_v46 = vadd.f32 %v447_v34, %v394_v63 }
  0xc2   :  { %v2529_v39 = vpop.f32.mrf.mxu0  ;;  %v2531_v25 = vpop.f32.mrf.mxu1 }
  0xc4   :  { %690 = vmatmul.f32.gmra.mxu2 %v1856_v29 }
  0xc5   :  { %743 = vmatmul.f32.gmra.mxu3 %v2163_v18  ;;  %796 = vmatmul.f32.gmra.mxu0 %v2166_v10 }
  0xc6   :  { %1468 = vmatmul.msk.f32.gmra.mxu1 %vm316_vm4, %v2169_v19 }
  0xc7   :  { %v397_v11 = vpop.f32.mrf.mxu2  ;;  %v450_v61 = vpop.f32.mrf.mxu3 }
  0xc8   :  { %v2538_v62 = vadd.f32 %v450_v61, %v397_v11 }
  0xca   :  { %v2540_v1 = vpop.f32.mrf.mxu0 }
  0xcb   :  { %v2542_v41 = vpop.f32.mrf.mxu1 }
  0xcc   :  { %693 = vmatmul.f32.gmra.mxu2 %v1917_v48 }
  0xcd   :  { %746 = vmatmul.f32.gmra.mxu3 %v2198_v35  ;;  %799 = vmatmul.f32.gmra.mxu0 %v2201_v36 }
  0xce   :  { %1469 = vmatmul.msk.f32.gmra.mxu1 %vm316_vm4, %v2204_v28 }
  0xcf   :  { %v400_v29 = vpop.f32.mrf.mxu2 }
  0xd0   :  { %v453_v18 = vpop.f32.mrf.mxu3 }
  0xd1   :  { %v2549_v10 = vadd.f32 %v453_v18, %v400_v29 }
  0xd2   :  { %v2551_v19 = vpop.f32.mrf.mxu0 }
  0xd3   :  { %v2553_v53 = vpop.f32.mrf.mxu1 }
  0xd4   :  { %696 = vmatmul.f32.gmra.mxu2 %v1975_v5  ;;  %v424_v5 = vadd.f32 %v2482_v27, %v2480_v22 }
  0xd5   :  { %749 = vmatmul.f32.gmra.mxu3 %v2236_v2  ;;  %802 = vmatmul.f32.gmra.mxu0 %v2239_v47 }
  0xd6   :  { %1470 = vmatmul.msk.f32.gmra.mxu1 %vm316_vm4, %v2242_v3 }
  0xd7   :  { %v403_v48 = vpop.f32.mrf.mxu2 }
  0xd8   :  { %v456_v35 = vpop.f32.mrf.mxu3 }
  0xd9   :  { %v2560_v36 = vadd.f32 %v456_v35, %v403_v48 }
  0xda   :  { %v582_v28 = vpop.f32.mrf.mxu0 }
  0xdb   :  { %v2562_v15 = vpop.f32.mrf.mxu1 }
  0xdc   :  { %699 = vmatmul.f32.gmra.mxu2 %v2036_v32  ;;  %v427_v32 = vadd.f32 %v426_v23, %v2509_v44 }
  0xdd   :  { %752 = vmatmul.f32.gmra.mxu3 %v2274_v13  ;;  %805 = vmatmul.f32.gmra.mxu0 %v2277_v4 }
  0xde   :  { %1471 = vmatmul.msk.f32.gmra.mxu1 %vm316_vm4, %v2280_v14 }
  0xdf   :  { %v476_v2 = vpop.f32.mrf.mxu2 }
  0xe0   :  { %v529_v47 = vpop.f32.mrf.mxu3  ;;  %v477_v3 = vadd.f32 %v476_v2, %v424_v5 }
  0xe2   :  { %v530_v63 = vadd.f32 %v529_v47, %v477_v3  ;;  %v585_v34 = vpop.f32.mrf.mxu0 }
  0xe3   :  { %v2571_v11 = vpop.f32.mrf.mxu1 }
  0xe4   :  { %v2573_v61 = vadd.f32 %v582_v28, %v530_v63  ;;  %702 = vmatmul.f32.gmra.mxu2 %v2085_v51  ;;  %v430_v51 = vadd.f32 %v2520_v57, %v2518_v54 }
  0xe5   :  { %755 = vmatmul.f32.gmra.mxu3 %v2309_v30  ;;  %808 = vmatmul.f32.gmra.mxu0 %v2312_v33 }
  0xe6   :  { %1472 = vmatmul.msk.f32.gmra.mxu1 %vm316_vm4, %v2315_v31 }
  0xe7   :  { %v479_v13 = vpop.f32.mrf.mxu2 }
  0xe8   :  { %v532_v4 = vpop.f32.mrf.mxu3  ;;  %v480_v14 = vadd.f32 %v479_v13, %v427_v32 }
  0xea   :  { %v533_v22 = vadd.f32 %v532_v4, %v480_v14  ;;  %v588_v27 = vpop.f32.mrf.mxu0 }
  0xeb   :  { %v2581_v29 = vpop.f32.mrf.mxu1 }
  0xec   :  { %v2583_v18 = vadd.f32 %v585_v34, %v533_v22  ;;  %705 = vmatmul.f32.gmra.mxu2 %v1789_v8  ;;  %v433_v8 = vadd.f32 %v2531_v25, %v2529_v39 }
  0xed   :  { %758 = vmatmul.f32.gmra.mxu3 %v2347_v52  ;;  %811 = vmatmul.f32.gmra.mxu0 %v2350_v50 }
  0xee   :  { %1473 = vmatmul.msk.f32.gmra.mxu1 %vm316_vm4, %v2353_v55 }
  0xef   :  { %v482_v30 = vpop.f32.mrf.mxu2 }
  0xf0   :  { %v535_v33 = vpop.f32.mrf.mxu3  ;;  %v483_v31 = vadd.f32 %v482_v30, %v430_v51 }
  0xf2   :  { %v536_v44 = vadd.f32 %v535_v33, %v483_v31  ;;  %v591_v23 = vpop.f32.mrf.mxu0 }
  0xf3   :  { %v2592_v48 = vpop.f32.mrf.mxu1 }
  0xf4   :  { %v2594_v35 = vadd.f32 %v588_v27, %v536_v44  ;;  %708 = vmatmul.f32.gmra.mxu2 %v1847_v26  ;;  %v436_v26 = vadd.f32 %v2542_v41, %v2540_v1 }
  0xf5   :  { %761 = vmatmul.f32.gmra.mxu3 %v2376_v9  ;;  %814 = vmatmul.f32.gmra.mxu0 %v2379_v12 }
  0xf6   :  { %1474 = vmatmul.msk.f32.gmra.mxu1 %vm316_vm4, %v2391_v17 }
  0xf7   :  { %v485_v52 = vpop.f32.mrf.mxu2 }
  0xf8   :  { %v538_v50 = vpop.f32.mrf.mxu3  ;;  %v486_v55 = vadd.f32 %v485_v52, %v433_v8 }
  0xfa   :  { %v539_v54 = vadd.f32 %v538_v50, %v486_v55  ;;  %v594_v57 = vpop.f32.mrf.mxu0 }
  0xfb   :  { %v2603_v28 = vpop.f32.mrf.mxu1 }
  0xfc   :  { %v2605_v5 = vadd.f32 %v591_v23, %v539_v54  ;;  %711 = vmatmul.f32.gmra.mxu2 %v1908_v45  ;;  %v439_v45 = vadd.f32 %v2553_v53, %v2551_v19 }
  0xfd   :  { %764 = vmatmul.f32.gmra.mxu3 %v2414_v37  ;;  %817 = vmatmul.f32.gmra.mxu0 %v2417_v38 }
  0xfe   :  { %1475 = vmatmul.msk.f32.gmra.mxu1 %vm316_vm4, %v2426_v40 }
  0xff   :  { %v488_v9 = vpop.f32.mrf.mxu2 }
 0x100   :  { %v541_v12 = vpop.f32.mrf.mxu3  ;;  %v489_v17 = vadd.f32 %v488_v9, %v436_v26 }
 0x102   :  { %v542_v39 = vadd.f32 %v541_v12, %v489_v17  ;;  %v597_v25 = vpop.f32.mrf.mxu0 }
 0x103   :  { %v2614_v2 = vpop.f32.mrf.mxu1 }
 0x104   :  { %v2616_v47 = vadd.f32 %v594_v57, %v542_v39  ;;  %714 = vmatmul.f32.gmra.mxu2 %v1966_v0 }
 0x105   :  { %767 = vmatmul.f32.gmra.mxu3 %v2446_v58  ;;  %820 = vmatmul.f32.gmra.mxu0 %v2449_v59 }
 0x106   :  { %1476 = vmatmul.msk.f32.gmra.mxu1 %vm316_vm4, %v2455_v6 }
 0x107   :  { %v491_v37 = vpop.f32.mrf.mxu2 }
 0x108   :  { %v544_v38 = vpop.f32.mrf.mxu3  ;;  %v492_v40 = vadd.f32 %v491_v37, %v439_v45 }
 0x10a   :  { %v545_v1 = vadd.f32 %v544_v38, %v492_v40  ;;  %v600_v41 = vpop.f32.mrf.mxu0 }
 0x10b   :  { %v2625_v3 = vpop.f32.mrf.mxu1 }
 0x10c   :  { %v2627_v63 = vadd.f32 %v597_v25, %v545_v1  ;;  %717 = vmatmul.f32.gmra.mxu2 %v2024_v24 }
 0x10d   :  { %770 = vmatmul.f32.gmra.mxu3 %v2472_v16  ;;  %823 = vmatmul.f32.gmra.mxu0 %v2475_v20 }
 0x10e   :  { %1477 = vmatmul.msk.f32.gmra.mxu1 %vm316_vm4, %v2478_v21 }
 0x10f   :  { %v494_v0 = vpop.f32.mrf.mxu2 }
 0x110   :  { %v547_v58 = vpop.f32.mrf.mxu3  ;;  %v495_v59 = vadd.f32 %v494_v0, %v2498_v42 }
 0x112   :  { %v548_v6 = vadd.f32 %v547_v58, %v495_v59  ;;  %v603_v19 = vpop.f32.mrf.mxu0 }
 0x113   :  { %v2635_v53 = vpop.f32.mrf.mxu1 }
 0x114   :  { %v2637_v34 = vadd.f32 %v600_v41, %v548_v6  ;;  %720 = vmatmul.f32.gmra.mxu2 %v2079_v49 }
 0x115   :  { %773 = vmatmul.f32.gmra.mxu3 %v2501_v43  ;;  %826 = vmatmul.f32.gmra.mxu0 %v2504_v56 }
 0x116   :  { %1478 = vmatmul.msk.f32.gmra.mxu1 %vm316_vm4, %v2507_v60 }
 0x117   :  { %v497_v24 = vpop.f32.mrf.mxu2 }
 0x118   :  { %v550_v16 = vpop.f32.mrf.mxu3  ;;  %v498_v20 = vadd.f32 %v497_v24, %v2516_v7 }
 0x11a   :  { %v551_v21 = vadd.f32 %v550_v16, %v498_v20  ;;  %v606_v42 = vpop.f32.mrf.mxu0 }
 0x11b   :  { %v2645_v32 = vpop.f32.mrf.mxu1 }
 0x11c   :  { %v2647_v13 = vadd.f32 %v603_v19, %v551_v21 }
 0x11f   :  { %v500_v4 = vpop.f32.mrf.mxu2 }
 0x120   :  { %v553_v14 = vpop.f32.mrf.mxu3  ;;  %v501_v49 = vadd.f32 %v500_v4, %v2527_v46 }
 0x122   :  { %v554_v43 = vadd.f32 %v553_v14, %v501_v49  ;;  %v609_v22 = vpop.f32.mrf.mxu0 }
 0x123   :  { %v2650_v56 = vpop.f32.mrf.mxu1 }
 0x124   :  { %v2652_v27 = vadd.f32 %v606_v42, %v554_v43 }
 0x127   :  { %v503_v60 = vpop.f32.mrf.mxu2 }
 0x128   :  { %v556_v51 = vpop.f32.mrf.mxu3  ;;  %v504_v7 = vadd.f32 %v503_v60, %v2538_v62  ;;  %v934_v60 = vmul.f32 %v2583_v18, %v2583_v18 }
 0x12a   :  { %v557_v30 = vadd.f32 %v556_v51, %v504_v7  ;;  %v612_v33 = vpop.f32.mrf.mxu0 }
 0x12b   :  { %v2655_v31 = vpop.f32.mrf.mxu1 }
 0x12c   :  { %v2657_v44 = vadd.f32 %v609_v22, %v557_v30 }
 0x12f   :  { %v506_v23 = vpop.f32.mrf.mxu2 }
 0x130   :  { %v559_v8 = vpop.f32.mrf.mxu3  ;;  %v507_v46 = vadd.f32 %v506_v23, %v2549_v10 }
 0x132   :  { %v560_v52 = vadd.f32 %v559_v8, %v507_v46  ;;  %v615_v50 = vpop.f32.mrf.mxu0 }
 0x133   :  { %v2660_v55 = vpop.f32.mrf.mxu1 }
 0x134   :  { %v2662_v54 = vadd.f32 %v612_v33, %v560_v52 }
 0x137   :  { %v509_v57 = vpop.f32.mrf.mxu2 }
 0x138   :  { %v562_v26 = vpop.f32.mrf.mxu3  ;;  %v510_v62 = vadd.f32 %v509_v57, %v2560_v36 }
 0x13a   :  { %v563_v9 = vadd.f32 %v562_v26, %v510_v62  ;;  %v794_v12 = vpop.f32.mrf.mxu0 }
 0x13b   :  { %v847_v17 = vpop.f32.mrf.mxu1 }
 0x13c   :  { %v2665_v39 = vadd.f32 %v615_v50, %v563_v9 }
 0x13f   :  { %v688_v25 = vpop.f32.mrf.mxu2 }
 0x140   :  { %v741_v45 = vpop.f32.mrf.mxu3  ;;  %v689_v37 = vadd.f32 %v688_v25, %v2562_v15 }
 0x142   :  { %v742_v10 = vadd.f32 %v741_v45, %v689_v37  ;;  %v797_v38 = vpop.f32.mrf.mxu0 }
 0x143   :  { %v850_v40 = vpop.f32.mrf.mxu1 }
 0x144   :  { %v795_v1 = vadd.f32 %v794_v12, %v742_v10  ;;  %v936_v12 = vmul.f32 %v2594_v35, %v2594_v35 }
 0x146   :  { %v2668_v41 = vadd.f32 %v847_v17, %v795_v1 }
 0x147   :  { %v691_v0 = vpop.f32.mrf.mxu2 }
 0x148   :  { %v744_v58 = vpop.f32.mrf.mxu3  ;;  %v692_v36 = vadd.f32 %v691_v0, %v2571_v11  ;;  %v884_v59 = vsel %vm883_vm5, %v2668_v41, 0.0  ;;  %v933_v15 = vmul.f32 %v2668_v41, %v2668_v41  ;;  %v932_v11 = vmul.f32 %v2573_v61, %v2573_v61 }
 0x149   :  { %v885_v6 = vadd.f32 %v884_v59, %v2573_v61 }
 0x14a   :  { %v745_v19 = vadd.f32 %v744_v58, %v692_v36  ;;  %v800_v24 = vpop.f32.mrf.mxu0  ;;  %v956_v42 = vsel %vm883_vm5, %v933_v15, 0.0 }
 0x14b   :  { %v853_v16 = vpop.f32.mrf.mxu1  ;;  %886 = vadd.xlane.f32.xlu0 %v885_v6  ;;  %v957_v22 = vadd.f32 %v956_v42, %v932_v11  ;;  %v938_v6 = vmul.f32 %v2605_v5, %v2605_v5 }
 0x14c   :  { %v798_v20 = vadd.f32 %v797_v38, %v745_v19 }
 0x14e   :  { %v2676_v21 = vadd.f32 %v850_v40, %v798_v20 }
 0x14f   :  { %v694_v4 = vpop.f32.mrf.mxu2 }
 0x150   :  { %v747_v14 = vpop.f32.mrf.mxu3  ;;  %v695_v49 = vadd.f32 %v694_v4, %v2581_v29  ;;  %v935_v43 = vmul.f32 %v2676_v21, %v2676_v21  ;;  %v888_v29 = vsel %vm883_vm5, %v2676_v21, 0.0 }
 0x151   :  { %v889_v9 = vadd.f32 %v888_v29, %v2583_v18 }
 0x152   :  { %v748_v51 = vadd.f32 %v747_v14, %v695_v49  ;;  %v960_v7 = vsel %vm883_vm5, %v935_v43, 0.0  ;;  %v803_v30 = vpop.f32.mrf.mxu0 }
 0x153   :  { %v856_v33 = vpop.f32.mrf.mxu1  ;;  %958 = vadd.xlane.f32.xlu0 %v957_v22  ;;  %v961_v23 = vadd.f32 %v960_v7, %v934_v60 }
 0x154   :  { %v801_v8 = vadd.f32 %v800_v24, %v748_v51  ;;  %v940_v51 = vmul.f32 %v2616_v47, %v2616_v47 }
 0x155   :  { %962 = vadd.xlane.f32.xlu1 %v961_v23 }
 0x156   :  { %v2687_v46 = vadd.f32 %v853_v16, %v801_v8 }
 0x157   :  { %v697_v52 = vpop.f32.mrf.mxu2 }
 0x158   :  { %v750_v50 = vpop.f32.mrf.mxu3  ;;  %v698_v57 = vadd.f32 %v697_v52, %v2592_v48  ;;  %v937_v26 = vmul.f32 %v2687_v46, %v2687_v46  ;;  %v892_v62 = vsel %vm883_vm5, %v2687_v46, 0.0 }
 0x159   :  { %v893_v48 = vadd.f32 %v892_v62, %v2594_v35 }
 0x15a   :  { %v751_v17 = vadd.f32 %v750_v50, %v698_v57  ;;  %v964_v25 = vsel %vm883_vm5, %v937_v26, 0.0  ;;  %v806_v45 = vpop.f32.mrf.mxu0 }
 0x15b   :  { %v859_v37 = vpop.f32.mrf.mxu1  ;;  %890 = vadd.xlane.f32.xlu0 %v889_v9  ;;  %v965_v10 = vadd.f32 %v964_v25, %v936_v12 }
 0x15c   :  { %v804_v38 = vadd.f32 %v803_v30, %v751_v17 }
 0x15d   :  { %966 = vadd.xlane.f32.xlu2 %v965_v10  ;;  %894 = vadd.xlane.f32.xlu1 %v893_v48 }
 0x15e   :  { %v2701_v40 = vadd.f32 %v856_v33, %v804_v38 }
 0x15f   :  { %v700_v1 = vpop.f32.mrf.mxu2 }
 0x160   :  { %v753_v0 = vpop.f32.mrf.mxu3  ;;  %v701_v58 = vadd.f32 %v700_v1, %v2603_v28  ;;  %v896_v36 = vsel %vm883_vm5, %v2701_v40, 0.0  ;;  %v939_v59 = vmul.f32 %v2701_v40, %v2701_v40 }
 0x161   :  { %v897_v20 = vadd.f32 %v896_v36, %v2605_v5 }
 0x162   :  { %v754_v19 = vadd.f32 %v753_v0, %v701_v58  ;;  %v968_v24 = vsel %vm883_vm5, %v939_v59, 0.0  ;;  %v809_v15 = vpop.f32.mrf.mxu0 }
 0x163   :  { %v862_v16 = vpop.f32.mrf.mxu1  ;;  %v969_v42 = vadd.f32 %v968_v24, %v938_v6 }
 0x164   :  { %v807_v4 = vadd.f32 %v806_v45, %v754_v19 }
 0x165   :  { %898 = vadd.xlane.f32.xlu1 %v897_v20  ;;  %970 = vadd.xlane.f32.xlu0 %v969_v42 }
 0x166   :  { %v2712_v28 = vadd.f32 %v859_v37, %v807_v4  ;;  %v944_v4 = vmul.f32 %v2637_v34, %v2637_v34 }
 0x167   :  { %v703_v14 = vpop.f32.mrf.mxu2 }
 0x168   :  { %v756_v11 = vpop.f32.mrf.mxu3  ;;  %v704_v49 = vadd.f32 %v703_v14, %v2614_v2  ;;  %v900_v43 = vsel %vm883_vm5, %v2712_v28, 0.0  ;;  %v941_v22 = vmul.f32 %v2712_v28, %v2712_v28 }
 0x169   :  { %v901_v60 = vadd.f32 %v900_v43, %v2616_v47 }
 0x16a   :  { %v757_v7 = vadd.f32 %v756_v11, %v704_v49  ;;  %v972_v30 = vsel %vm883_vm5, %v941_v22, 0.0  ;;  %v812_v33 = vpop.f32.mrf.mxu0 }
 0x16b   :  { %v865_v23 = vpop.f32.mrf.mxu1  ;;  %902 = vadd.xlane.f32.xlu2 %v901_v60  ;;  %v973_v8 = vadd.f32 %v972_v30, %v940_v51 }
 0x16c   :  { %v810_v29 = vadd.f32 %v809_v15, %v757_v7 }
 0x16d   :  { %974 = vadd.xlane.f32.xlu1 %v973_v8 }
 0x16e   :  { %v2723_v2 = vadd.f32 %v862_v16, %v810_v29  ;;  %v946_v29 = vmul.f32 %v2647_v13, %v2647_v13 }
 0x16f   :  { %v706_v52 = vpop.f32.mrf.mxu2 }
 0x170   :  { %v759_v50 = vpop.f32.mrf.mxu3  ;;  %v707_v57 = vadd.f32 %v706_v52, %v2625_v3  ;;  %v904_v26 = vsel %vm883_vm5, %v2723_v2, 0.0  ;;  %v943_v17 = vmul.f32 %v2723_v2, %v2723_v2  ;;  %v942_v3 = vmul.f32 %v2627_v63, %v2627_v63 }
 0x171   :  { %v905_v62 = vadd.f32 %v904_v26, %v2627_v63 }
 0x172   :  { %v760_v9 = vadd.f32 %v759_v50, %v707_v57  ;;  %v815_v12 = vpop.f32.mrf.mxu0  ;;  %v976_v10 = vsel %vm883_vm5, %v943_v17, 0.0 }
 0x173   :  { %v868_v25 = vpop.f32.mrf.mxu1  ;;  %906 = vadd.xlane.f32.xlu2 %v905_v62  ;;  %v977_v36 = vadd.f32 %v976_v10, %v942_v3 }
 0x174   :  { %v813_v45 = vadd.f32 %v812_v33, %v760_v9 }
 0x176   :  { %v2731_v37 = vadd.f32 %v865_v23, %v813_v45 }
 0x177   :  { %v709_v48 = vpop.f32.mrf.mxu2 }
 0x178   :  { %v762_v38 = vpop.f32.mrf.mxu3  ;;  %v710_v1 = vadd.f32 %v709_v48, %v2635_v53  ;;  %v908_v0 = vsel %vm883_vm5, %v2731_v37, 0.0  ;;  %v945_v19 = vmul.f32 %v2731_v37, %v2731_v37  ;;  %v948_v48 = vmul.f32 %v2652_v27, %v2652_v27 }
 0x179   :  { %v909_v58 = vadd.f32 %v908_v0, %v2637_v34 }
 0x17a   :  { %v763_v59 = vadd.f32 %v762_v38, %v710_v1  ;;  %v818_v6 = vpop.f32.mrf.mxu0  ;;  %v980_v20 = vsel %vm883_vm5, %v945_v19, 0.0 }
 0x17b   :  { %910 = vadd.xlane.f32.xlu0 %v909_v58  ;;  %978 = vadd.xlane.f32.xlu2 %v977_v36  ;;  %v871_v15 = vpop.f32.mrf.mxu1  ;;  %v981_v43 = vadd.f32 %v980_v20, %v944_v4  ;;  %v950_v20 = vmul.f32 %v2657_v44, %v2657_v44 }
 0x17c   :  { %v816_v24 = vadd.f32 %v815_v12, %v763_v59 }
 0x17e   :  { %v2742_v16 = vadd.f32 %v868_v25, %v816_v24 }
 0x17f   :  { %v712_v53 = vpop.f32.mrf.mxu2 }
 0x180   :  { %v765_v42 = vpop.f32.mrf.mxu3  ;;  %v713_v14 = vadd.f32 %v712_v53, %v2645_v32  ;;  %v912_v11 = vsel %vm883_vm5, %v2742_v16, 0.0  ;;  %v947_v60 = vmul.f32 %v2742_v16, %v2742_v16 }
 0x181   :  { %v913_v49 = vadd.f32 %v912_v11, %v2647_v13 }
 0x182   :  { %v766_v22 = vadd.f32 %v765_v42, %v713_v14  ;;  %v821_v7 = vpop.f32.mrf.mxu0  ;;  %v984_v33 = vsel %vm883_vm5, %v947_v60, 0.0 }
 0x183   :  { %914 = vadd.xlane.f32.xlu1 %v913_v49  ;;  %982 = vadd.xlane.f32.xlu0 %v981_v43  ;;  %v874_v23 = vpop.f32.mrf.mxu1  ;;  %v985_v57 = vadd.f32 %v984_v33, %v946_v29 }
 0x184   :  { %v819_v51 = vadd.f32 %v818_v6, %v766_v22 }
 0x186   :  { %v2753_v30 = vadd.f32 %v871_v15, %v819_v51 }
 0x187   :  { %v715_v32 = vpop.f32.mrf.mxu2 }
 0x188   :  { %v768_v8 = vpop.f32.mrf.mxu3  ;;  %v716_v52 = vadd.f32 %v715_v32, %v2650_v56  ;;  %v916_v50 = vsel %vm883_vm5, %v2753_v30, 0.0  ;;  %v949_v9 = vmul.f32 %v2753_v30, %v2753_v30 }
 0x189   :  { %v917_v26 = vadd.f32 %v916_v50, %v2652_v27 }
 0x18a   :  { %v769_v62 = vadd.f32 %v768_v8, %v716_v52  ;;  %v824_v25 = vpop.f32.mrf.mxu0  ;;  %v988_v45 = vsel %vm883_vm5, %v949_v9, 0.0  ;;  %v954_v52 = vmul.f32 %v2665_v39, %v2665_v39 }
 0x18b   :  { %986 = vadd.xlane.f32.xlu1 %v985_v57  ;;  %918 = vadd.xlane.f32.xlu2 %v917_v26  ;;  %v989_v0 = vadd.f32 %v988_v45, %v948_v48  ;;  %v877_v58 = vpop.f32.mrf.mxu1  ;;  %v1572_v26 = vmov 0  }
 0x18c   :  { %v822_v12 = vadd.f32 %v821_v7, %v769_v62  ;;  %1515 = vset.pattern.permute.xlu0 %v1572_v26  ;;  %1516 = vset.pattern.permute.xlu1 %v1572_v26 }
 0x18d   :  { %1517 = vset.pattern.permute.xlu2 %v1572_v26 }
 0x18e   :  { %v2764_v17 = vadd.f32 %v874_v23, %v822_v12 }
 0x18f   :  { %v718_v10 = vpop.f32.mrf.mxu2 }
 0x190   :  { %v771_v56 = vpop.f32.mrf.mxu3  ;;  %v719_v38 = vadd.f32 %v718_v10, %v2655_v31  ;;  %v920_v3 = vsel %vm883_vm5, %v2764_v17, 0.0  ;;  %v951_v59 = vmul.f32 %v2764_v17, %v2764_v17 }
 0x191   :  { %v921_v1 = vadd.f32 %v920_v3, %v2657_v44 }
 0x192   :  { %v772_v36 = vadd.f32 %v771_v56, %v719_v38  ;;  %v992_v24 = vsel %vm883_vm5, %v951_v59, 0.0  ;;  %v827_v4 = vpop.f32.mrf.mxu0 }
 0x193   :  { %922 = vadd.xlane.f32.xlu0 %v921_v1  ;;  %990 = vadd.xlane.f32.xlu2 %v989_v0  ;;  %v993_v11 = vadd.f32 %v992_v24, %v950_v20  ;;  %v880_v22 = vpop.f32.mrf.mxu1 }
 0x194   :  { %v825_v6 = vadd.f32 %v824_v25, %v772_v36 }
 0x196   :  { %v2775_v19 = vadd.f32 %v877_v58, %v825_v6 }
 0x197   :  { %v721_v15 = vpop.f32.mrf.mxu2 }
 0x198   :  { %v774_v31 = vpop.f32.mrf.mxu3  ;;  %v722_v53 = vadd.f32 %v721_v15, %v2660_v55  ;;  %v924_v42 = vsel %vm883_vm5, %v2775_v19, 0.0  ;;  %v953_v43 = vmul.f32 %v2775_v19, %v2775_v19  ;;  %v952_v55 = vmul.f32 %v2662_v54, %v2662_v54 }
 0x199   :  { %v925_v14 = vadd.f32 %v924_v42, %v2662_v54 }
 0x19a   :  { %v775_v49 = vadd.f32 %v774_v31, %v722_v53  ;;  %v996_v7 = vsel %vm883_vm5, %v953_v43, 0.0 }
 0x19b   :  { %926 = vadd.xlane.f32.xlu1 %v925_v14  ;;  %994 = vadd.xlane.f32.xlu0 %v993_v11  ;;  %v997_v23 = vadd.f32 %v996_v7, %v952_v55  ;;  %v1052_v55 = vld [vmem:[%s2968_s3] sm:$0xff] }
 0x19c   :  { %v828_v60 = vadd.f32 %v827_v4, %v775_v49 }
 0x19e   :  { %v2786_v51 = vadd.f32 %v880_v22, %v828_v60 }
 0x1a0   :  { %v928_v33 = vsel %vm883_vm5, %v2786_v51, 0.0  ;;  %v955_v8 = vmul.f32 %v2786_v51, %v2786_v51 }
 0x1a1   :  { %v929_v32 = vadd.f32 %v928_v33, %v2665_v39 }
 0x1a2   :  { %v1000_v29 = vsel %vm883_vm5, %v955_v8, 0.0 }
 0x1a3   :  { %998 = vadd.xlane.f32.xlu1 %v997_v23  ;;  %930 = vadd.xlane.f32.xlu2 %v929_v32  ;;  %v1001_v50 = vadd.f32 %v1000_v29, %v954_v52 }
 0x1ab   :  { %1002 = vadd.xlane.f32.xlu2 %v1001_v50 }
 0x1be   :  { %v887_v57 = vpop.xlane.xlu0 %886 }
 0x1bf   :  { %v1004_v62 = vmul.f32 0.0051020407, %v887_v57 }
 0x1c1   :  { %v1028_v12 = vmul.f32 %v1004_v62, %v1004_v62 }
 0x1c6   :  { %v959_v9 = vpop.xlane.xlu0 %958 }
 0x1c7   :  { %v1016_v25 = vmul.f32 0.0051020407, %v959_v9 }
 0x1c8   :  { %v963_v45 = vpop.xlane.xlu1 %962 }
 0x1c9   :  { %v1040_v10 = vsub.f32 %v1016_v25, %v1028_v12  ;;  %v1017_v0 = vmul.f32 0.0051020407, %v963_v45 }
 0x1cb   :  { %v1064_v56 = vadd.f32 1e-05, %v1040_v10 }
 0x1cd   :  { %1522 = vrsqrt.f32 %v1064_v56  ;;  %vm1082_vm7 = vweird.f32 %v1064_v56 }
 0x1ce   :  { %v891_v48 = vpop.xlane.xlu0 %890 }
 0x1cf   :  { %v2799_v38 = vmul.f32 0.0051020407, %v891_v48  ;;  %v1208_v48 = vld [vmem:[%s2969_s4] sm:$0xff] }
 0x1d0   :  { %v967_v3 = vpop.xlane.xlu2 %966  ;;  %v895_v1 = vpop.xlane.xlu1 %894 }
 0x1d1   :  { %v1029_v58 = vmul.f32 %v2799_v38, %v2799_v38  ;;  %v2803_v36 = vmul.f32 0.0051020407, %v895_v1  ;;  %v1018_v24 = vmul.f32 0.0051020407, %v967_v3 }
 0x1d3   :  { %v1523_v59 = vpop.eup %1522  ;;  %v1041_v6 = vsub.f32 %v1017_v0, %v1029_v58  ;;  %v1030_v15 = vmul.f32 %v2803_v36, %v2803_v36 }
 0x1d4   :  { %v1077_v31 = vmul.f32 %v1523_v59, %v1064_v56  ;;  %vm1083_vm6 = vweird.f32 %v1523_v59 }
 0x1d5   :  { %v1065_v20 = vadd.f32 1e-05, %v1041_v6  ;;  %v1042_v53 = vsub.f32 %v1018_v24, %v1030_v15  ;;  %vm1084_vm8 = vmor %vm1082_vm7, %vm1083_vm6 }
 0x1d6   :  { %v1078_v42 = vmul.f32 %v1523_v59, %v1077_v31  ;;  %v1053_v31 = vld [vmem:[%s2968_s3 + $0x8] sm:$0xff] }
 0x1d7   :  { %1524 = vrsqrt.f32 %v1065_v20  ;;  %v1066_v4 = vadd.f32 1e-05, %v1042_v53  ;;  %vm1092_vm10 = vweird.f32 %v1065_v20 }
 0x1d8   :  { %v1079_v14 = vmul.f32 0.5, %v1078_v42  ;;  %v899_v11 = vpop.xlane.xlu1 %898  ;;  %v971_v49 = vpop.xlane.xlu0 %970 }
 0x1d9   :  { %1526 = vrsqrt.f32 %v1066_v4  ;;  %v2807_v43 = vmul.f32 0.0051020407, %v899_v11  ;;  %v1019_v7 = vmul.f32 0.0051020407, %v971_v49  ;;  %v1054_v49 = vld [vmem:[%s2968_s3 + $0x10] sm:$0xff]  ;;  %vm1102_vm13 = vweird.f32 %v1066_v4 }
 0x1da   :  { %v1080_v22 = vsub.f32 1.5, %v1079_v14 }
 0x1db   :  { %v1031_v60 = vmul.f32 %v2807_v43, %v2807_v43 }
 0x1dc   :  { %v1081_v33 = vmul.f32 %v1523_v59, %v1080_v22 }
 0x1dd   :  { %v1525_v23 = vpop.eup %1524  ;;  %v1043_v32 = vsub.f32 %v1019_v7, %v1031_v60 }
 0x1de   :  { %v1087_v8 = vmul.f32 %v1525_v23, %v1065_v20  ;;  %v903_v29 = vpop.xlane.xlu2 %902  ;;  %v1085_v52 = vsel %vm1084_vm8, %v1523_v59, %v1081_v33  ;;  %vm1093_vm9 = vweird.f32 %v1525_v23  ;;  %v1209_v20 = vld [vmem:[%s2969_s4 + $0x8] sm:$0xff] }
 0x1df   :  { %v1527_v50 = vpop.eup %1526  ;;  %v1067_v57 = vadd.f32 1e-05, %v1043_v32  ;;  %v2814_v26 = vmul.f32 0.0051020407, %v903_v29  ;;  %v1196_v9 = vmul.f32 %v1085_v52, %v1052_v55  ;;  %vm1094_vm12 = vmor %vm1092_vm10, %vm1093_vm9 }
 0x1e0   :  { %v1088_v12 = vmul.f32 %v1525_v23, %v1087_v8  ;;  %v1097_v25 = vmul.f32 %v1527_v50, %v1066_v4  ;;  %v975_v45 = vpop.xlane.xlu1 %974  ;;  %vm1103_vm11 = vweird.f32 %v1527_v50 }
 0x1e1   :  { %1528 = vrsqrt.f32 %v1067_v57  ;;  %v1032_v10 = vmul.f32 %v2814_v26, %v2814_v26  ;;  %v1020_v56 = vmul.f32 0.0051020407, %v975_v45  ;;  %1246 = vperm.xlu0 %1515, %v1196_v9   ;;  %v1220_v0 = vmul.f32 %v1196_v9, %v1004_v62  ;;  %vm1104_vm14 = vmor %vm1102_vm13, %vm1103_vm11 }
 0x1e2   :  { %v1089_v3 = vmul.f32 0.5, %v1088_v12  ;;  %v1098_v1 = vmul.f32 %v1527_v50, %v1097_v25  ;;  %vm1112_vm0 = vweird.f32 %v1067_v57 }
 0x1e3   :  { %v1044_v58 = vsub.f32 %v1020_v56, %v1032_v10  ;;  %v1232_v24 = vsub.f32 %v1208_v48, %v1220_v0 }
 0x1e4   :  { %v1090_v59 = vsub.f32 1.5, %v1089_v3  ;;  %v1099_v6 = vmul.f32 0.5, %v1098_v1  ;;  %v1210_v3 = vld [vmem:[%s2969_s4 + $0x10] sm:$0xff]  ;;  %v1055_v1 = vld [vmem:[%s2968_s3 + $0x18] sm:$0xff] }
 0x1e5   :  { %v1068_v15 = vadd.f32 1e-05, %v1044_v58  ;;  %1330 = vperm.xlu1 %1516, %v1232_v24  }
 0x1e6   :  { %v1091_v53 = vmul.f32 %v1525_v23, %v1090_v59  ;;  %v1100_v42 = vsub.f32 1.5, %v1099_v6  ;;  %v907_v14 = vpop.xlane.xlu2 %906 }
 0x1e7   :  { %v1529_v11 = vpop.eup %1528  ;;  %1530 = vrsqrt.f32 %v1068_v15  ;;  %v2831_v29 = vmul.f32 0.0051020407, %v907_v14  ;;  %vm1122_vm3 = vweird.f32 %v1068_v15 }
 0x1e8   :  { %v1095_v62 = vsel %vm1094_vm12, %v1525_v23, %v1091_v53  ;;  %v1101_v22 = vmul.f32 %v1527_v50, %v1100_v42  ;;  %v1107_v60 = vmul.f32 %v1529_v11, %v1067_v57  ;;  %vm1113_vm15 = vweird.f32 %v1529_v11  ;;  %v1211_v57 = vld [vmem:[%s2969_s4 + $0x18] sm:$0xff] }
 0x1e9   :  { %v1197_v7 = vmul.f32 %v1095_v62, %v1053_v31  ;;  %v1033_v10 = vmul.f32 %v2831_v29, %v2831_v29  ;;  %vm1114_vm1 = vmor %vm1112_vm0, %vm1113_vm15 }
 0x1ea   :  { %v1105_v55 = vsel %vm1104_vm14, %v1527_v50, %v1101_v22  ;;  %v1108_v33 = vmul.f32 %v1529_v11, %v1107_v60 }
 0x1eb   :  { %v1221_v32 = vmul.f32 %v1197_v7, %v2799_v38  ;;  %v1198_v8 = vmul.f32 %v1105_v55, %v1054_v49 }
 0x1ec   :  { %v1109_v23 = vmul.f32 0.5, %v1108_v33 }
 0x1ed   :  { %v1531_v52 = vpop.eup %1530  ;;  %1256 = vperm.xlu2 %1517, %v1198_v8   ;;  %v1233_v9 = vsub.f32 %v1209_v20, %v1221_v32  ;;  %1251 = vperm.xlu1 %1516, %v1197_v7   ;;  %v1222_v45 = vmul.f32 %v1198_v8, %v2803_v36 }
 0x1ee   :  { %v1110_v12 = vsub.f32 1.5, %v1109_v23  ;;  %v1117_v4 = vmul.f32 %v1531_v52, %v1068_v15  ;;  %v911_v25 = vpop.xlane.xlu0 %910  ;;  %v979_v50 = vpop.xlane.xlu2 %978  ;;  %vm1123_vm2 = vweird.f32 %v1531_v52 }
 0x1ef   :  { %v1021_v56 = vmul.f32 0.0051020407, %v979_v50  ;;  %1335 = vperm.xlu0 %1515, %v1233_v9   ;;  %v2842_v59 = vmul.f32 0.0051020407, %v911_v25  ;;  %v1234_v24 = vsub.f32 %v1210_v3, %v1222_v45  ;;  %vm1124_vm4 = vmor %vm1122_vm3, %vm1123_vm2 }
 0x1f0   :  { %v1111_v38 = vmul.f32 %v1529_v11, %v1110_v12  ;;  %v1118_v48 = vmul.f32 %v1531_v52, %v1117_v4 }
 0x1f1   :  { %v1045_v0 = vsub.f32 %v1021_v56, %v1033_v10  ;;  %v1034_v22 = vmul.f32 %v2842_v59, %v2842_v59 }
 0x1f2   :  { %v1119_v58 = vmul.f32 0.5, %v1118_v48  ;;  %v1115_v36 = vsel %vm1114_vm1, %v1529_v11, %v1111_v38  ;;  %v1056_v11 = vld [vmem:[%s2968_s3 + $0x20] sm:$0xff] }
 0x1f3   :  { %v1069_v6 = vadd.f32 1e-05, %v1045_v0  ;;  %v1199_v31 = vmul.f32 %v1115_v36, %v1055_v1  ;;  %v1057_v0 = vld [vmem:[%s2968_s3 + $0x28] sm:$0xff] }
 0x1f4   :  { %v1120_v53 = vsub.f32 1.5, %v1119_v58 }
 0x1f5   :  { %1532 = vrsqrt.f32 %v1069_v6  ;;  %1340 = vperm.xlu2 %1517, %v1234_v24   ;;  %v1223_v42 = vmul.f32 %v1199_v31, %v2807_v43  ;;  %v1212_v43 = vld [vmem:[%s2969_s4 + $0x20] sm:$0xff]  ;;  %vm1132_vm7 = vweird.f32 %v1069_v6 }
 0x1f6   :  { %v1121_v14 = vmul.f32 %v1531_v52, %v1120_v53  ;;  %v915_v62 = vpop.xlane.xlu1 %914  ;;  %v983_v49 = vpop.xlane.xlu0 %982 }
 0x1f7   :  { %v1022_v60 = vmul.f32 0.0051020407, %v983_v49  ;;  %v1235_v7 = vsub.f32 %v1211_v57, %v1223_v42  ;;  %v2856_v32 = vmul.f32 0.0051020407, %v915_v62 }
 0x1f8   :  { %v1125_v55 = vsel %vm1124_vm4, %v1531_v52, %v1121_v14 }
 0x1f9   :  { %v1046_v33 = vsub.f32 %v1022_v60, %v1034_v22  ;;  %1345 = vperm.xlu1 %1516, %v1235_v7   ;;  %v1200_v20 = vmul.f32 %v1125_v55, %v1056_v11  ;;  %v1035_v50 = vmul.f32 %v2856_v32, %v2856_v32 }
 0x1fb   :  { %v1533_v15 = vpop.eup %1532  ;;  %v1070_v8 = vadd.f32 1e-05, %v1046_v33  ;;  %v1224_v23 = vmul.f32 %v1200_v20, %v2814_v26  ;;  %v1058_v33 = vld [vmem:[%s2968_s3 + $0x30] sm:$0xff] }
 0x1fc   :  { %v1127_v9 = vmul.f32 %v1533_v15, %v1069_v6  ;;  %vm1133_vm6 = vweird.f32 %v1533_v15 }
 0x1fd   :  { %1534 = vrsqrt.f32 %v1070_v8  ;;  %1261 = vperm.xlu2 %1517, %v1199_v31   ;;  %v1236_v12 = vsub.f32 %v1212_v43, %v1224_v23  ;;  %vm1134_vm8 = vmor %vm1132_vm7, %vm1133_vm6  ;;  %vm1142_vm10 = vweird.f32 %v1070_v8  ;;  %v1213_v43 = vld [vmem:[%s2969_s4 + $0x28] sm:$0xff] }
 0x1fe   :  { %v1128_v4 = vmul.f32 %v1533_v15, %v1127_v9  ;;  %v987_v25 = vpop.xlane.xlu1 %986  ;;  %v919_v52 = vpop.xlane.xlu2 %918 }
 0x1ff   :  { %v1023_v45 = vmul.f32 0.0051020407, %v987_v25  ;;  %1350 = vperm.xlu0 %1515, %v1236_v12   ;;  %v2861_v26 = vmul.f32 0.0051020407, %v919_v52 }
 0x200   :  { %v1129_v10 = vmul.f32 0.5, %v1128_v4 }
 0x201   :  { %v1047_v56 = vsub.f32 %v1023_v45, %v1035_v50  ;;  %1266 = vperm.xlu1 %1516, %v1200_v20   ;;  %v1036_v57 = vmul.f32 %v2861_v26, %v2861_v26 }
 0x202   :  { %v1130_v38 = vsub.f32 1.5, %v1129_v10 }
 0x203   :  { %v1535_v48 = vpop.eup %1534  ;;  %v1071_v3 = vadd.f32 1e-05, %v1047_v56 }
 0x204   :  { %v1137_v1 = vmul.f32 %v1535_v48, %v1070_v8  ;;  %v1131_v58 = vmul.f32 %v1533_v15, %v1130_v38  ;;  %vm1143_vm9 = vweird.f32 %v1535_v48 }
 0x205   :  { %1536 = vrsqrt.f32 %v1071_v3  ;;  %vm1144_vm11 = vmor %vm1142_vm10, %vm1143_vm9  ;;  %vm1152_vm13 = vweird.f32 %v1071_v3 }
 0x206   :  { %v1138_v36 = vmul.f32 %v1535_v48, %v1137_v1  ;;  %v923_v24 = vpop.xlane.xlu0 %922  ;;  %v991_v31 = vpop.xlane.xlu2 %990  ;;  %v1135_v53 = vsel %vm1134_vm8, %v1533_v15, %v1131_v58 }
 0x207   :  { %v1024_v42 = vmul.f32 0.0051020407, %v991_v31  ;;  %v1201_v14 = vmul.f32 %v1135_v53, %v1057_v0  ;;  %v2868_v22 = vmul.f32 0.0051020407, %v923_v24  ;;  %v1059_v0 = vld [vmem:[%s2968_s3 + $0x38] sm:$0xff] }
 0x208   :  { %v1139_v62 = vmul.f32 0.5, %v1138_v36  ;;  %v1214_v36 = vld [vmem:[%s2969_s4 + $0x30] sm:$0xff] }
 0x209   :  { %v1048_v49 = vsub.f32 %v1024_v42, %v1036_v57  ;;  %1271 = vperm.xlu2 %1517, %v1201_v14   ;;  %v1225_v7 = vmul.f32 %v1201_v14, %v2831_v29  ;;  %v1037_v29 = vmul.f32 %v2868_v22, %v2868_v22 }
 0x20a   :  { %v1140_v6 = vsub.f32 1.5, %v1139_v62 }
 0x20b   :  { %v1537_v11 = vpop.eup %1536  ;;  %v1072_v60 = vadd.f32 1e-05, %v1048_v49  ;;  %v1237_v25 = vsub.f32 %v1213_v43, %v1225_v7  ;;  %v1215_v43 = vld [vmem:[%s2969_s4 + $0x38] sm:$0xff] }
 0x20c   :  { %v1147_v55 = vmul.f32 %v1537_v11, %v1071_v3  ;;  %v1141_v20 = vmul.f32 %v1535_v48, %v1140_v6  ;;  %vm1153_vm12 = vweird.f32 %v1537_v11 }
 0x20d   :  { %1538 = vrsqrt.f32 %v1072_v60  ;;  %vm1154_vm14 = vmor %vm1152_vm13, %vm1153_vm12  ;;  %vm1162_vm0 = vweird.f32 %v1072_v60 }
 0x20e   :  { %v1148_v15 = vmul.f32 %v1537_v11, %v1147_v55  ;;  %v927_v23 = vpop.xlane.xlu1 %926  ;;  %v995_v9 = vpop.xlane.xlu0 %994  ;;  %v1145_v12 = vsel %vm1144_vm11, %v1535_v48, %v1141_v20 }
 0x20f   :  { %v1025_v8 = vmul.f32 0.0051020407, %v995_v9  ;;  %v1202_v4 = vmul.f32 %v1145_v12, %v1058_v33  ;;  %v2879_v56 = vmul.f32 0.0051020407, %v927_v23 }
 0x210   :  { %v1149_v52 = vmul.f32 0.5, %v1148_v15  ;;  %v1060_v15 = vld [vmem:[%s2968_s3 + $0x40] sm:$0xff] }
 0x211   :  { %v1049_v50 = vsub.f32 %v1025_v8, %v1037_v29  ;;  %1276 = vperm.xlu1 %1516, %v1202_v4   ;;  %1355 = vperm.xlu2 %1517, %v1237_v25   ;;  %v1226_v1 = vmul.f32 %v1202_v4, %v2842_v59  ;;  %v1038_v59 = vmul.f32 %v2879_v56, %v2879_v56 }
 0x212   :  { %v1150_v45 = vsub.f32 1.5, %v1149_v52 }
 0x213   :  { %v1539_v10 = vpop.eup %1538  ;;  %v1073_v38 = vadd.f32 1e-05, %v1049_v50  ;;  %v1238_v14 = vsub.f32 %v1214_v36, %v1226_v1  ;;  %v1216_v36 = vld [vmem:[%s2969_s4 + $0x40] sm:$0xff] }
 0x214   :  { %v1157_v48 = vmul.f32 %v1539_v10, %v1072_v60  ;;  %v1151_v58 = vmul.f32 %v1537_v11, %v1150_v45  ;;  %vm1163_vm15 = vweird.f32 %v1539_v10 }
 0x215   :  { %1540 = vrsqrt.f32 %v1073_v38  ;;  %vm1164_vm1 = vmor %vm1162_vm0, %vm1163_vm15  ;;  %vm1172_vm3 = vweird.f32 %v1073_v38 }
 0x216   :  { %v1158_v24 = vmul.f32 %v1539_v10, %v1157_v48  ;;  %v999_v31 = vpop.xlane.xlu1 %998  ;;  %v931_v53 = vpop.xlane.xlu2 %930  ;;  %v1155_v57 = vsel %vm1154_vm14, %v1537_v11, %v1151_v58 }
 0x217   :  { %v1026_v3 = vmul.f32 0.0051020407, %v999_v31  ;;  %v1203_v42 = vmul.f32 %v1155_v57, %v1059_v0  ;;  %v2890_v33 = vmul.f32 0.0051020407, %v931_v53 }
 0x218   :  { %v1159_v62 = vmul.f32 0.5, %v1158_v24 }
 0x219   :  { %v1050_v49 = vsub.f32 %v1026_v3, %v1038_v59  ;;  %1281 = vperm.xlu0 %1515, %v1203_v42   ;;  %1360 = vperm.xlu1 %1516, %v1238_v14   ;;  %v1227_v20 = vmul.f32 %v1203_v42, %v2856_v32  ;;  %v1039_v8 = vmul.f32 %v2890_v33, %v2890_v33  ;;  %v1062_v14 = vld [vmem:[%s2968_s3 + $0x50] sm:$0xff] }
 0x21a   :  { %v1160_v6 = vsub.f32 1.5, %v1159_v62 }
 0x21b   :  { %v1541_v7 = vpop.eup %1540  ;;  %v1074_v55 = vadd.f32 1e-05, %v1050_v49  ;;  %v1239_v60 = vsub.f32 %v1215_v43, %v1227_v20  ;;  %v1217_v49 = vld [vmem:[%s2969_s4 + $0x48] sm:$0xff] }
 0x21c   :  { %v1167_v11 = vmul.f32 %v1541_v7, %v1073_v38  ;;  %v1161_v23 = vmul.f32 %v1539_v10, %v1160_v6  ;;  %vm1173_vm2 = vweird.f32 %v1541_v7 }
 0x21d   :  { %1542 = vrsqrt.f32 %v1074_v55  ;;  %vm1174_vm4 = vmor %vm1172_vm3, %vm1173_vm2  ;;  %vm1182_vm7 = vweird.f32 %v1074_v55 }
 0x21e   :  { %v1168_v9 = vmul.f32 %v1541_v7, %v1167_v11  ;;  %v1003_v12 = vpop.xlane.xlu2 %1002  ;;  %v1165_v29 = vsel %vm1164_vm1, %v1539_v10, %v1161_v23  ;;  %v1061_v10 = vld [vmem:[%s2968_s3 + $0x48] sm:$0xff]  ;;  %v1063_v23 = vld [vmem:[%s2968_s3 + $0x58] sm:$0xff]  ;;  %s1573_s3 = smov [#allocation2]  }
 0x21f   :  { %v1027_v32 = vmul.f32 0.0051020407, %v1003_v12  ;;  %v1204_v4 = vmul.f32 %v1165_v29, %v1060_v15  ;;  %v1218_v15 = vld [vmem:[%s2969_s4 + $0x50] sm:$0xff] }
 0x220   :  { %v1169_v25 = vmul.f32 0.5, %v1168_v9 }
 0x221   :  { %v1051_v52 = vsub.f32 %v1027_v32, %v1039_v8  ;;  %1365 = vperm.xlu0 %1515, %v1239_v60   ;;  %1286 = vperm.xlu2 %1517, %v1204_v4   ;;  %v1228_v48 = vmul.f32 %v1204_v4, %v2861_v26 }
 0x222   :  { %v1170_v50 = vsub.f32 1.5, %v1169_v25 }
 0x223   :  { %v1543_v45 = vpop.eup %1542  ;;  %v1075_v1 = vadd.f32 1e-05, %v1051_v52  ;;  %v1240_v57 = vsub.f32 %v1216_v36, %v1228_v48 }
 0x224   :  { %v1177_v0 = vmul.f32 %v1543_v45, %v1074_v55  ;;  %v1171_v58 = vmul.f32 %v1541_v7, %v1170_v50  ;;  %vm1183_vm6 = vweird.f32 %v1543_v45 }
 0x225   :  { %1544 = vrsqrt.f32 %v1075_v1  ;;  %vm1184_vm8 = vmor %vm1182_vm7, %vm1183_vm6  ;;  %vm1192_vm10 = vweird.f32 %v1075_v1 }
 0x226   :  { %v1178_v24 = vmul.f32 %v1543_v45, %v1177_v0  ;;  %v1175_v31 = vsel %vm1174_vm4, %v1541_v7, %v1171_v58 }
 0x227   :  { %v1205_v53 = vmul.f32 %v1175_v31, %v1061_v10 }
 0x228   :  { %v1179_v59 = vmul.f32 0.5, %v1178_v24 }
 0x229   :  { %1291 = vperm.xlu1 %1516, %v1205_v53   ;;  %1370 = vperm.xlu2 %1517, %v1240_v57   ;;  %v1229_v3 = vmul.f32 %v1205_v53, %v2868_v22 }
 0x22a   :  { %v1180_v26 = vsub.f32 1.5, %v1179_v59 }
 0x22b   :  { %v1545_v38 = vpop.eup %1544  ;;  %v1241_v11 = vsub.f32 %v1217_v49, %v1229_v3 }
 0x22c   :  { %v1187_v42 = vmul.f32 %v1545_v38, %v1075_v1  ;;  %v1181_v62 = vmul.f32 %v1543_v45, %v1180_v26  ;;  %vm1193_vm9 = vweird.f32 %v1545_v38 }
 0x22d   :  { %vm1194_vm11 = vmor %vm1192_vm10, %vm1193_vm9 }
 0x22e   :  { %v1188_v6 = vmul.f32 %v1545_v38, %v1187_v42  ;;  %v1185_v7 = vsel %vm1184_vm8, %v1543_v45, %v1181_v62 }
 0x22f   :  { %v1206_v20 = vmul.f32 %v1185_v7, %v1062_v14 }
 0x230   :  { %v1189_v43 = vmul.f32 0.5, %v1188_v6 }
 0x231   :  { %1296 = vperm.xlu0 %1515, %v1206_v20   ;;  %1375 = vperm.xlu1 %1516, %v1241_v11   ;;  %v1230_v55 = vmul.f32 %v1206_v20, %v2879_v56  ;;  %v1219_v56 = vld [vmem:[%s2969_s4 + $0x58] sm:$0xff]  ;;  %s1440_s4 = sshll.u32 %s1573_s3, 4  ;;  %s1441_s4 = int_to_ptr.vmem [resolvable:$true] %s1440_s4 }
 0x232   :  { %v1190_v22 = vsub.f32 1.5, %v1189_v43 }
 0x233   :  { %v1242_v29 = vsub.f32 %v1218_v15, %v1230_v55 }
 0x234   :  { %v1191_v9 = vmul.f32 %v1545_v38, %v1190_v22 }
 0x236   :  { %v1195_v12 = vsel %vm1194_vm11, %v1545_v38, %v1191_v9 }
 0x237   :  { %v1207_v8 = vmul.f32 %v1195_v12, %v1063_v23 }
 0x239   :  { %1380 = vperm.xlu0 %1515, %v1242_v29   ;;  %1301 = vperm.xlu2 %1517, %v1207_v8   ;;  %v1231_v32 = vmul.f32 %v1207_v8, %v2890_v33 }
 0x23b   :  { %v1243_v60 = vsub.f32 %v1219_v56, %v1231_v32 }
 0x241   :  { %1385 = vperm.xlu2 %1517, %v1243_v60  }
 0x247   :  { %v1257_v4 = vpop.permute.xlu2 %1256 }
 0x248   :  { %v1308_v25 = vmul.f32 %v1257_v4, %v2594_v35  ;;  %v1309_v52 = vmul.f32 %v1257_v4, %v2687_v46 }
 0x24f   :  { %v1341_v50 = vpop.permute.xlu2 %1340 }
 0x250   :  { %v1392_v45 = vadd.f32 %v1341_v50, %v1308_v25  ;;  %v1393_v1 = vadd.f32 %v1341_v50, %v1309_v52 }
 0x252   :  { %1416 = vst [vmem:[#allocation2 + $0x20] sm:$0xff] %v1392_v45 }
 0x253   :  { %1417 = vst.msk [vmem:[#allocation2 + $0x28] sm:$0xff] %vm883_vm5, %v1393_v1  ;;  %v1247_v48 = vpop.permute.xlu0 %1246 }
 0x254   :  { %v1304_v33 = vmul.f32 %v1247_v48, %v2573_v61  ;;  %v1305_v0 = vmul.f32 %v1247_v48, %v2668_v41 }
 0x257   :  { %v1331_v10 = vpop.permute.xlu1 %1330  ;;  %v1262_v24 = vpop.permute.xlu2 %1261 }
 0x258   :  { %v1388_v58 = vadd.f32 %v1331_v10, %v1304_v33  ;;  %v1389_v36 = vadd.f32 %v1331_v10, %v1305_v0  ;;  %v1310_v61 = vmul.f32 %v1262_v24, %v2605_v5  ;;  %v1311_v41 = vmul.f32 %v1262_v24, %v2701_v40 }
 0x25a   :  { %1412 = vst [vmem:[#allocation2] sm:$0xff] %v1388_v58 }
 0x25b   :  { %1413 = vst.msk [vmem:[#allocation2 + $0x8] sm:$0xff] %vm883_vm5, %v1389_v36 }
 0x25f   :  { %v1252_v35 = vpop.permute.xlu1 %1251 }
 0x260   :  { %v1306_v46 = vmul.f32 %v1252_v35, %v2583_v18  ;;  %v1307_v31 = vmul.f32 %v1252_v35, %v2676_v21 }
 0x261   :  { %v1336_v53 = vpop.permute.xlu0 %1335 }
 0x262   :  { %v1390_v57 = vadd.f32 %v1336_v53, %v1306_v46  ;;  %v1391_v59 = vadd.f32 %v1336_v53, %v1307_v31 }
 0x263   :  { %v1272_v26 = vpop.permute.xlu2 %1271 }
 0x264   :  { %1414 = vst [vmem:[#allocation2 + $0x10] sm:$0xff] %v1390_v57  ;;  %v1314_v38 = vmul.f32 %v1272_v26, %v2627_v63  ;;  %v1315_v3 = vmul.f32 %v1272_v26, %v2723_v2 }
 0x265   :  { %1415 = vst.msk [vmem:[#allocation2 + $0x18] sm:$0xff] %vm883_vm5, %v1391_v59 }
 0x26b   :  { %v1346_v42 = vpop.permute.xlu1 %1345  ;;  %v1356_v14 = vpop.permute.xlu2 %1355 }
 0x26c   :  { %v1394_v18 = vadd.f32 %v1346_v42, %v1310_v61  ;;  %v1395_v62 = vadd.f32 %v1346_v42, %v1311_v41  ;;  %v1398_v21 = vadd.f32 %v1356_v14, %v1314_v38  ;;  %v1399_v49 = vadd.f32 %v1356_v14, %v1315_v3 }
 0x26e   :  { %1418 = vst [vmem:[#allocation2 + $0x30] sm:$0xff] %v1394_v18 }
 0x26f   :  { %1419 = vst.msk [vmem:[#allocation2 + $0x38] sm:$0xff] %vm883_vm5, %v1395_v62 }
 0x270   :  { %1422 = vst [vmem:[#allocation2 + $0x50] sm:$0xff] %v1398_v21 }
 0x271   :  { %1423 = vst.msk [vmem:[#allocation2 + $0x58] sm:$0xff] %vm883_vm5, %v1399_v49  ;;  %v1351_v63 = vpop.permute.xlu0 %1350 }
 0x273   :  { %v1267_v6 = vpop.permute.xlu1 %1266 }
 0x274   :  { %v1312_v5 = vmul.f32 %v1267_v6, %v2616_v47  ;;  %v1313_v40 = vmul.f32 %v1267_v6, %v2712_v28 }
 0x276   :  { %v1396_v7 = vadd.f32 %v1351_v63, %v1312_v5  ;;  %v1397_v2 = vadd.f32 %v1351_v63, %v1313_v40 }
 0x278   :  { %1420 = vst [vmem:[#allocation2 + $0x40] sm:$0xff] %v1396_v7 }
 0x279   :  { %1421 = vst.msk [vmem:[#allocation2 + $0x48] sm:$0xff] %vm883_vm5, %v1397_v2 }
 0x27b   :  { %v1287_v20 = vpop.permute.xlu2 %1286 }
 0x27c   :  { %v1320_v11 = vmul.f32 %v1287_v20, %v2652_v27  ;;  %v1321_v43 = vmul.f32 %v1287_v20, %v2753_v30 }
 0x283   :  { %v1277_v22 = vpop.permute.xlu1 %1276  ;;  %v1371_v55 = vpop.permute.xlu2 %1370 }
 0x284   :  { %v1404_v15 = vadd.f32 %v1371_v55, %v1320_v11  ;;  %v1405_v23 = vadd.f32 %v1371_v55, %v1321_v43  ;;  %v1316_v47 = vmul.f32 %v1277_v22, %v2637_v34  ;;  %v1317_v28 = vmul.f32 %v1277_v22, %v2731_v37 }
 0x286   :  { %1428 = vst [vmem:[#allocation2 + $0x80] sm:$0xff] %v1404_v15 }
 0x287   :  { %1429 = vst.msk [vmem:[#allocation2 + $0x88] sm:$0xff] %vm883_vm5, %v1405_v23 }
 0x28b   :  { %v1361_v9 = vpop.permute.xlu1 %1360  ;;  %v1282_v12 = vpop.permute.xlu0 %1281 }
 0x28c   :  { %v1400_v29 = vadd.f32 %v1361_v9, %v1316_v47  ;;  %v1401_v8 = vadd.f32 %v1361_v9, %v1317_v28  ;;  %v1318_v27 = vmul.f32 %v1282_v12, %v2647_v13  ;;  %v1319_v30 = vmul.f32 %v1282_v12, %v2742_v16 }
 0x28e   :  { %1424 = vst [vmem:[#allocation2 + $0x60] sm:$0xff] %v1400_v29 }
 0x28f   :  { %1425 = vst.msk [vmem:[#allocation2 + $0x68] sm:$0xff] %vm883_vm5, %v1401_v8 }
 0x293   :  { %v1366_v32 = vpop.permute.xlu0 %1365  ;;  %v1302_v56 = vpop.permute.xlu2 %1301 }
 0x294   :  { %v1402_v60 = vadd.f32 %v1366_v32, %v1318_v27  ;;  %v1403_v4 = vadd.f32 %v1366_v32, %v1319_v30  ;;  %v1326_v34 = vmul.f32 %v1302_v56, %v2665_v39  ;;  %v1327_v37 = vmul.f32 %v1302_v56, %v2786_v51 }
 0x296   :  { %1426 = vst [vmem:[#allocation2 + $0x70] sm:$0xff] %v1402_v60 }
 0x297   :  { %1427 = vst.msk [vmem:[#allocation2 + $0x78] sm:$0xff] %vm883_vm5, %v1403_v4 }
 0x29b   :  { %v1292_v25 = vpop.permute.xlu1 %1291  ;;  %v1386_v52 = vpop.permute.xlu2 %1385 }
 0x29c   :  { %v1410_v50 = vadd.f32 %v1386_v52, %v1326_v34  ;;  %v1411_v45 = vadd.f32 %v1386_v52, %v1327_v37  ;;  %v1322_v13 = vmul.f32 %v1292_v25, %v2657_v44  ;;  %v1323_v16 = vmul.f32 %v1292_v25, %v2764_v17 }
 0x29e   :  { %1434 = vst [vmem:[#allocation2 + $0xb0] sm:$0xff] %v1410_v50 }
 0x29f   :  { %1435 = vst.msk [vmem:[#allocation2 + $0xb8] sm:$0xff] %vm883_vm5, %v1411_v45 }
 0x2a3   :  { %v1376_v1 = vpop.permute.xlu1 %1375  ;;  %v1297_v48 = vpop.permute.xlu0 %1296 }
 0x2a4   :  { %v1406_v33 = vadd.f32 %v1376_v1, %v1322_v13  ;;  %v1407_v0 = vadd.f32 %v1376_v1, %v1323_v16  ;;  %v1324_v39 = vmul.f32 %v1297_v48, %v2662_v54  ;;  %v1325_v51 = vmul.f32 %v1297_v48, %v2775_v19 }
 0x2a6   :  { %1430 = vst [vmem:[#allocation2 + $0x90] sm:$0xff] %v1406_v33 }
 0x2a7   :  { %1431 = vst.msk [vmem:[#allocation2 + $0x98] sm:$0xff] %vm883_vm5, %v1407_v0 }
 0x2ab   :  { %v1381_v44 = vpop.permute.xlu0 %1380 }
 0x2ac   :  { %v1408_v10 = vadd.f32 %v1381_v44, %v1324_v39  ;;  %v1409_v17 = vadd.f32 %v1381_v44, %v1325_v51 }
 0x2ae   :  { %1432 = vst [vmem:[#allocation2 + $0xa0] sm:$0xff] %v1408_v10 }
 0x2af   :  { %1433 = vst.msk [vmem:[#allocation2 + $0xa8] sm:$0xff] %vm883_vm5, %v1409_v17 }
 0x2b0   :  { %1448 = dma.vmem_to_hbm [thread:$0]  %s1441_s4, 3072, %s1443_s6, [#allocation3], %s1574_s7, %s1574_s7, %s1575_s8  }
 0x2b1   :  { %1570 = dma.done.wait [#allocation3], 3072  }
 0x2b2   :  { %1571 = vsyncadd [#allocation3], 4294964224 }
 0x2b3   :  { %1453 = vsyncpa [#allocation3], 1 }

</bundles_post_ra>
